<compile_context>
chip_gen: v7x
topology: tpu7x:2x2x1
jax: 0.10.0
libtpu: 0.0.40
codegen_flags: <defaults>
</compile_context>

<pallas_src>
import functools

import jax
import jax.numpy as jnp
from jax.experimental import pallas as pl
from jax.experimental.pallas import tpu as pltpu

ALPHA = 0.1
K_PROP = 2
H_PAD = 128          # hidden (64) padded to one lane-dense vreg width


def _round_up(v, m):
    return (v + m - 1) // m * m


def _choose_config(n_nodes):
    """Per-generation VMEM budget and tile table (production sizes)."""
    try:
        cap = getattr(pltpu.get_tpu_info(), "vmem_capacity_bytes", None)
    except Exception:
        cap = None
    cap = cap or (64 << 20)                        # conservative fallback (v7x-sized)
    vmem_limit = min(int(cap * 0.8), 110 << 20)    # ~51 MiB on v7x, ~102-110 MiB v5e/v6e

    # Round N to a multiple of the row tile only -- never to a huge tk multiple,
    # since the O(N^2) A stream grows with n_pad^2.
    n_pad = _round_up(max(n_nodes, 256), 256)
    tm_cands = (1024, 512, 256) if cap >= (100 << 20) else (512, 256)
    tm = next(t for t in tm_cands if n_pad % t == 0)
    # A tile is int8 -> tm*tk bytes; keep 2 buffers under half the budget.
    tk = next((t for t in (8192, 4096, 2048, 1024, 512, 256)
               if t <= n_pad and n_pad % t == 0 and 2 * tm * t <= vmem_limit // 2), tm)
    # Keep the whole bf16 z ([n_pad, 128]) resident in VMEM when it fits.
    z_resident = 2 * n_pad * H_PAD * 2 <= vmem_limit // 3
    return n_pad, tm, tk, z_resident, vmem_limit


# ---------------- Kernel 1: feature transform (lin1 + relu, lin2) ------------
def feat_kernel(x_ref, w1_ref, b1_ref, w2_ref, b2_ref, z0_ref):
    # eval mode -> F.dropout is identity
    h1 = jnp.dot(x_ref[...], w1_ref[...], preferred_element_type=jnp.float32)
    h1 = jnp.maximum(h1 + b1_ref[...], 0.0)
    h2 = jnp.dot(h1, w2_ref[...], preferred_element_type=jnp.float32) + b2_ref[...]
    z0_ref[...] = h2.astype(jnp.bfloat16)          # z_0 = h2, bf16 stream


def _z_block(z_ref, k, tk, z_resident):
    # resident z: full [n_p, 128] array in VMEM, slice the k-th chunk in-kernel;
    # streaming z: the (tk, 128) chunk is the whole block already.
    if z_resident:
        return z_ref[pl.ds(pl.multiple_of(k * tk, tk), tk), :]
    return z_ref[...]


# ---------- Kernel 2: one APPNP step  z_out = s*(Aq @ z_in) + alpha*z0 -------
# grid = (row_tiles, k_tiles): rows "parallel", reduction k last / "arbitrary".
def prop_kernel(a_ref, z_ref, z0_ref, scale_ref, zout_ref, acc_ref,
                *, tk, z_resident):
    k = pl.program_id(1)

    @pl.when(k == 0)
    def _():
        acc_ref[...] = jnp.zeros_like(acc_ref)

    a = a_ref[...].astype(jnp.bfloat16)            # int8 -> bf16 on the VPU (free)
    acc_ref[...] += jnp.dot(a, _z_block(z_ref, k, tk, z_resident),
                            preferred_element_type=jnp.float32)

    @pl.when(k == pl.num_programs(1) - 1)
    def _():
        z_new = (acc_ref[...] * scale_ref[0]
                 + ALPHA * z0_ref[...].astype(jnp.float32))
        zout_ref[...] = z_new.astype(jnp.bfloat16)


# ---- Kernel 3: last APPNP step fused with per-row-tile global mean pool -----
# Emits pooled partials [ni, B, H] (one per row tile) so the row axis stays
# "parallel" (v7x megacore); XLA does the tiny reduction + final linear.
def prop_pool_kernel(a_ref, z_ref, z0_ref, scale_ref, pool_ref, part_ref,
                     acc_ref, *, tk, z_resident):
    k = pl.program_id(1)

    @pl.when(k == 0)
    def _():
        acc_ref[...] = jnp.zeros_like(acc_ref)

    a = a_ref[...].astype(jnp.bfloat16)
    acc_ref[...] += jnp.dot(a, _z_block(z_ref, k, tk, z_resident),
                            preferred_element_type=jnp.float32)

    @pl.when(k == pl.num_programs(1) - 1)
    def _():
        z2 = acc_ref[...] * scale_ref[0] + ALPHA * z0_ref[...].astype(jnp.float32)
        part_ref[0] = jnp.dot(pool_ref[...], z2,     # fused mean-pool partial
                              preferred_element_type=jnp.float32)


@functools.partial(jax.jit,
                   static_argnames=("tm", "tk", "z_resident", "vmem_limit"))
def appnp2net_forward(x_p, a_q, a_scale, pool_p, w1t_p, b1_p, w2t_p, b2_p,
                      w3t_p, b3_p, *, tm, tk, z_resident, vmem_limit):
    """All node-dim inputs pre-padded; a_q = int8 A_hat, a_scale folds (1-alpha)."""
    n_p, f_in = x_p.shape
    h_p = w1t_p.shape[1]
    b_p = pool_p.shape[0]
    assert n_p % tm == 0 and n_p % tk == 0
    ni, nk = n_p // tm, n_p // tk

    # --- features: z0 = h2 (bf16), tiled over rows; x keeps true feature width ---
    z0 = pl.pallas_call(
        feat_kernel,
        out_shape=jax.ShapeDtypeStruct((n_p, h_p), jnp.bfloat16),
        grid_spec=pltpu.PrefetchScalarGridSpec(
            num_scalar_prefetch=0,
            grid=(ni,),
            in_specs=[pl.BlockSpec((tm, f_in), lambda i: (i, 0)),
                      pl.BlockSpec((f_in, h_p), lambda i: (0, 0)),
                      pl.BlockSpec((1, h_p), lambda i: (0, 0)),
                      pl.BlockSpec((h_p, h_p), lambda i: (0, 0)),
                      pl.BlockSpec((1, h_p), lambda i: (0, 0))],
            out_specs=pl.BlockSpec((tm, h_p), lambda i: (i, 0))),
        compiler_params=pltpu.CompilerParams(
            dimension_semantics=("parallel",),
            vmem_limit_bytes=vmem_limit),
    )(x_p, w1t_p, b1_p, w2t_p, b2_p)

    # z BlockSpec: resident full array (DMA'd once, revisited) or streamed chunks.
    if z_resident:
        z_spec = pl.BlockSpec((n_p, h_p), lambda i, k: (0, 0))
    else:
        z_spec = pl.BlockSpec((tk, h_p), lambda i, k: (k, 0))
    scale_spec = pl.BlockSpec(memory_space=pltpu.MemorySpace.SMEM)

    # --- K-1 intermediate propagation passes (int8 A_hat streaming) ---
    prop_body = functools.partial(prop_kernel, tk=tk, z_resident=z_resident)
    z = z0
    for _ in range(K_PROP - 1):
        z = pl.pallas_call(
            prop_body,
            out_shape=jax.ShapeDtypeStruct((n_p, h_p), jnp.bfloat16),
            grid_spec=pltpu.PrefetchScalarGridSpec(
                num_scalar_prefetch=0,
                grid=(ni, nk),
                in_specs=[pl.BlockSpec((tm, tk), lambda i, k: (i, k)),
                          z_spec,
                          pl.BlockSpec((tm, h_p), lambda i, k: (i, 0)),
                          scale_spec],
                out_specs=pl.BlockSpec((tm, h_p), lambda i, k: (i, 0)),
                scratch_shapes=[pltpu.VMEM((tm, h_p), jnp.float32)]),
            compiler_params=pltpu.CompilerParams(
                dimension_semantics=("parallel", "arbitrary"),
                vmem_limit_bytes=vmem_limit),
        )(a_q, z, z0, a_scale)

    # --- final pass: last APPNP step + per-row-tile mean-pool partials ---
    pool_body = functools.partial(prop_pool_kernel, tk=tk, z_resident=z_resident)
    partials = pl.pallas_call(
        pool_body,
        out_shape=jax.ShapeDtypeStruct((ni, b_p, h_p), jnp.float32),
        grid_spec=pltpu.PrefetchScalarGridSpec(
            num_scalar_prefetch=0,
            grid=(ni, nk),
            in_specs=[pl.BlockSpec((tm, tk), lambda i, k: (i, k)),
                      z_spec,
                      pl.BlockSpec((tm, h_p), lambda i, k: (i, 0)),
                      scale_spec,
                      pl.BlockSpec((b_p, tm), lambda i, k: (0, i))],
            out_specs=pl.BlockSpec((1, b_p, h_p), lambda i, k: (i, 0, 0)),
            scratch_shapes=[pltpu.VMEM((tm, h_p), jnp.float32)]),
        compiler_params=pltpu.CompilerParams(
            dimension_semantics=("parallel", "arbitrary"),
            vmem_limit_bytes=vmem_limit),
    )(a_q, z, z0, a_scale, pool_p)

    # Tiny O(B*H) epilogue in plain XLA: reduce partials, final linear.
    pooled = jnp.sum(partials, axis=0)                       # [b_p, h_p]
    out = jnp.dot(pooled, w3t_p,
                  precision=jax.lax.Precision.HIGHEST) + b3_p
    return out                                               # [b_p, C]


# ------------------------- host-side glue (padded) ---------------------------
def build_propagation_matrix_q(edge_index, num_nodes, n_pad, alpha):
    """D^-1/2 (A + I) D^-1/2, dense, zero-padded, quantized to int8.

    Returns (a_q int8 [n_pad, n_pad], a_scale f32 [1]) with (1 - alpha) folded
    into the dequant scale.  Note: duplicate edges collapse (host-side glue).
    """
    src, dst = edge_index
    adj = jnp.zeros((n_pad, n_pad), jnp.float32)
    adj = adj.at[dst, src].set(1.0)                      # message src -> dst
    self_loop = jnp.zeros((n_pad,), jnp.float32).at[:num_nodes].set(1.0)
    adj = adj + jnp.diag(self_loop)                      # self loops on real nodes
    deg = adj.sum(axis=1)
    d_inv_sqrt = jnp.where(deg > 0, jax.lax.rsqrt(jnp.maximum(deg, 1e-12)), 0.0)
    a_hat = d_inv_sqrt[:, None] * adj * d_inv_sqrt[None, :]
    max_abs = jnp.maximum(jnp.max(jnp.abs(a_hat)), 1e-12)
    q_scale = max_abs / 127.0
    a_q = jnp.clip(jnp.round(a_hat / q_scale), -127.0, 127.0).astype(jnp.int8)
    a_scale = ((1.0 - alpha) * q_scale).reshape((1,)).astype(jnp.float32)
    return a_q, a_scale


def build_mean_pool_matrix(batch, num_nodes, b_pad, n_pad):
    """[b_pad, n_pad] mean-pool matrix, zero for padded graphs / padded nodes."""
    valid = jnp.arange(n_pad) < num_nodes
    batch_p = jnp.where(valid, jnp.pad(batch, (0, n_pad - num_nodes)), -1)
    onehot = (batch_p[None, :] == jnp.arange(b_pad)[:, None]).astype(jnp.float32)
    counts = onehot.sum(axis=1, keepdims=True)
    return onehot / jnp.maximum(counts, 1.0)


def pad_to(x, shape):
    return jnp.pad(x, [(0, t - s) for s, t in zip(x.shape, shape)])


if __name__ == "__main__":
    # dataset = (num_node_features, num_classes)
    F_IN, N_CLASSES = 16, 4
    HIDDEN = 64
    N_NODES = 8
    N_GRAPHS = 2

    # Per-generation VMEM budget (v5e/v6e 128 MiB, v7x 64 MiB) + production tiles.
    _np_auto, _tm_auto, _tk_auto, _zres_auto, VMEM_LIMIT = _choose_config(N_NODES)

    # Demo deliberately uses tiny tiles so the (row, k) grid is 2x2 and both the
    # k-accumulation and the per-row-tile pooled partials are exercised.  Real
    # graph sizes should use the _choose_config tiles (tm>=512, tk>=1024).
    NP, TM, TK = 256, 128, 128
    HP = H_PAD
    BP = _round_up(N_GRAPHS, 8)

    key = jax.random.PRNGKey(0)
    keys = jax.random.split(key, 8)

    # node features
    x = jax.random.normal(keys[0], (N_NODES, F_IN), jnp.float32)

    # small undirected graph: two 4-node ring components
    src = jnp.array([0, 1, 1, 2, 2, 3, 3, 0, 4, 5, 5, 6, 6, 7, 7, 4], jnp.int32)
    dst = jnp.array([1, 0, 2, 1, 3, 2, 0, 3, 5, 4, 6, 5, 7, 6, 4, 7], jnp.int32)
    edge_index = jnp.stack([src, dst])
    batch = jnp.array([0, 0, 0, 0, 1, 1, 1, 1], jnp.int32)

    # parameters (PyTorch Linear weight is [out, in]; we pass W^T as [in, out])
    w1t = 0.1 * jax.random.normal(keys[1], (F_IN, HIDDEN), jnp.float32)
    b1 = 0.1 * jax.random.normal(keys[2], (1, HIDDEN), jnp.float32)
    w2t = 0.1 * jax.random.normal(keys[3], (HIDDEN, HIDDEN), jnp.float32)
    b2 = 0.1 * jax.random.normal(keys[4], (1, HIDDEN), jnp.float32)
    w3t = 0.1 * jax.random.normal(keys[5], (HIDDEN, N_CLASSES), jnp.float32)
    b3 = 0.1 * jax.random.normal(keys[6], (1, N_CLASSES), jnp.float32)

    # glue: padded int8 adjacency (scale folds 1-alpha) + padded mean-pool matrix
    a_q, a_scale = build_propagation_matrix_q(edge_index, N_NODES, NP, ALPHA)
    pool_p = build_mean_pool_matrix(batch, N_NODES, BP, NP)

    x_p = pad_to(x, (NP, F_IN))            # feature dim kept at true width (16)
    w1t_p = pad_to(w1t, (F_IN, HP))
    b1_p = pad_to(b1, (1, HP))
    w2t_p = pad_to(w2t, (HP, HP))
    b2_p = pad_to(b2, (1, HP))
    w3t_p = pad_to(w3t, (HP, N_CLASSES))   # class dim stays true (XLA epilogue)
    b3_p = b3

    # pure-JAX reference mirroring the kernel's quantization (int8 A, bf16 z stream)
    with jax.default_matmul_precision("highest"):
        h1 = jnp.maximum(x_p @ w1t_p + b1_p, 0.0)
        h2 = h1 @ w2t_p + b2_p
        z0_ref = h2.astype(jnp.bfloat16).astype(jnp.float32)
        a_deq = a_q.astype(jnp.float32)
        s = a_scale[0]
        z_ref = z0_ref
        for step in range(K_PROP):
            z_ref = (a_deq @ z_ref) * s + ALPHA * z0_ref
            if step < K_PROP - 1:
                z_ref = z_ref.astype(jnp.bfloat16).astype(jnp.float32)
        ref = (pool_p @ z_ref @ w3t_p + b3_p)[:N_GRAPHS, :N_CLASSES]

    # run both z paths: resident-in-VMEM and k-streamed
    for z_res in (True, False):
        out_p = appnp2net_forward(x_p, a_q, a_scale, pool_p, w1t_p, b1_p,
                                  w2t_p, b2_p, w3t_p, b3_p,
                                  tm=TM, tk=TK, z_resident=z_res,
                                  vmem_limit=VMEM_LIMIT)
        out_p = jax.block_until_ready(out_p)
        out = out_p[:N_GRAPHS, :N_CLASSES]
        assert jnp.allclose(out, ref, atol=2e-3, rtol=2e-3), (z_res, out, ref)

    print("KERNEL_OK")
</pallas_src>

<mosaic_0001>
module attributes {stable_mosaic.version = 11 : i64} {
  func.func @prop_pool_kernel(%arg0: i32, %arg1: i32, %arg2: memref<128x128xi8, #tpu.memory_space<vmem>>, %arg3: memref<256x128xbf16, #tpu.memory_space<vmem>>, %arg4: memref<128x128xbf16, #tpu.memory_space<vmem>>, %arg5: memref<1xf32, #tpu.memory_space<smem>>, %arg6: memref<8x128xf32, #tpu.memory_space<vmem>>, %arg7: memref<1x8x128xf32, #tpu.memory_space<vmem>>, %arg8: memref<128x128xf32, #tpu.memory_space<vmem>>) attributes {dimension_semantics = [#tpu.dimension_semantics<parallel>, #tpu.dimension_semantics<arbitrary>], iteration_bounds = array<i64: 2, 2>, scalar_prefetch = 0 : i64, scratch_operands = 1 : i64, tpu.core_type = #tpu.core_type<tc>, window_params = [{transform_indices = @transform_0, window_bounds = array<i64: 128, 128>}, {pipeline_mode = #tpu.pipeline_mode<synchronous>, transform_indices = @transform_1, window_bounds = array<i64: 256, 128>}, {transform_indices = @transform_2, window_bounds = array<i64: 128, 128>}, {transform_indices = @transform_3, window_bounds = array<i64: 1>}, {transform_indices = @transform_4, window_bounds = array<i64: 8, 128>}, {transform_indices = @transform_5, window_bounds = array<i64: 1, 8, 128>}]} {
    %c0_i32 = arith.constant 0 : i32
    %0 = arith.cmpi eq, %arg1, %c0_i32 : i32
    %1 = arith.extui %0 : i1 to i32
    %c0_i32_0 = arith.constant 0 : i32
    %2 = arith.cmpi ne, %1, %c0_i32_0 : i32
    scf.if %2 {
      %cst_8 = arith.constant 0.000000e+00 : f32
      %16 = vector.broadcast %cst_8 : f32 to vector<128x128xf32>
      %c0_9 = arith.constant 0 : index
      %c0_10 = arith.constant 0 : index
      %17 = vector.load %arg8[%c0_9, %c0_10] : memref<128x128xf32, #tpu.memory_space<vmem>>, vector<128x128xf32>
      tpu.vector_store %arg8[%c0_9, %c0_10], %16 {strides = array<i32>} : memref<128x128xf32, #tpu.memory_space<vmem>>, vector<128x128xf32>,
    } else {
    }
    %c0 = arith.constant 0 : index
    %c0_1 = arith.constant 0 : index
    %3 = vector.load %arg2[%c0, %c0_1] : memref<128x128xi8, #tpu.memory_space<vmem>>, vector<128x128xi8>
    %4 = arith.sitofp %3 : vector<128x128xi8> to vector<128x128xbf16>
    %c0_2 = arith.constant 0 : index
    %c0_3 = arith.constant 0 : index
    %5 = vector.load %arg8[%c0_2, %c0_3] : memref<128x128xf32, #tpu.memory_space<vmem>>, vector<128x128xf32>
    %c128_i32 = arith.constant 128 : i32
    %6 = arith.muli %arg1, %c128_i32 : i32
    %7 = tpu.assume_multiple %6, 128 : i32
    %8 = arith.index_cast %7 : i32 to index
    %c0_4 = arith.constant 0 : index
    %9 = vector.load %arg3[%8, %c0_4] : memref<256x128xbf16, #tpu.memory_space<vmem>>, vector<128x128xbf16>
    %cst = arith.constant dense<0.000000e+00> : vector<128x128xf32>
    %10 = tpu.matmul %4, %9, %cst {dimension_numbers = #tpu.dot_dimension_numbers<[1], [0], [0], [1], [0, 0, 1, 1], [], []>} : vector<128x128xbf16>, vector<128x128xbf16>, vector<128x128xf32> -> vector<128x128xf32>
    %11 = arith.addf %5, %10 : vector<128x128xf32>
    %c0_5 = arith.constant 0 : index
    %c0_6 = arith.constant 0 : index
    %12 = vector.load %arg8[%c0_5, %c0_6] : memref<128x128xf32, #tpu.memory_space<vmem>>, vector<128x128xf32>
    tpu.vector_store %arg8[%c0_5, %c0_6], %11 {strides = array<i32>} : memref<128x128xf32, #tpu.memory_space<vmem>>, vector<128x128xf32>,
    %c1_i32 = arith.constant 1 : i32
    %13 = arith.cmpi eq, %arg1, %c1_i32 : i32
    %14 = arith.extui %13 : i1 to i32
    %c0_i32_7 = arith.constant 0 : i32
    %15 = arith.cmpi ne, %14, %c0_i32_7 : i32
    scf.if %15 {
      %c0_8 = arith.constant 0 : index
      %c0_9 = arith.constant 0 : index
      %16 = vector.load %arg8[%c0_8, %c0_9] : memref<128x128xf32, #tpu.memory_space<vmem>>, vector<128x128xf32>
      %c0_10 = arith.constant 0 : index
      %17 = memref.load %arg5[%c0_10] : memref<1xf32, #tpu.memory_space<smem>>
      %18 = vector.broadcast %17 : f32 to vector<128x128xf32>
      %19 = arith.mulf %16, %18 : vector<128x128xf32>
      %c0_11 = arith.constant 0 : index
      %c0_12 = arith.constant 0 : index
      %20 = vector.load %arg4[%c0_11, %c0_12] : memref<128x128xbf16, #tpu.memory_space<vmem>>, vector<128x128xbf16>
      %21 = arith.extf %20 : vector<128x128xbf16> to vector<128x128xf32>
      %cst_13 = arith.constant 1.000000e-01 : f32
      %22 = vector.broadcast %cst_13 : f32 to vector<128x128xf32>
      %23 = arith.mulf %22, %21 : vector<128x128xf32>
      %24 = arith.addf %19, %23 : vector<128x128xf32>
      %c0_14 = arith.constant 0 : index
      %c0_15 = arith.constant 0 : index
      %25 = vector.load %arg6[%c0_14, %c0_15] : memref<8x128xf32, #tpu.memory_space<vmem>>, vector<8x128xf32>
      %cst_16 = arith.constant dense<0.000000e+00> : vector<8x128xf32>
      %26 = tpu.matmul %25, %24, %cst_16 {dimension_numbers = #tpu.dot_dimension_numbers<[1], [0], [0], [1], [0, 0, 1, 1], [], []>} : vector<8x128xf32>, vector<128x128xf32>, vector<8x128xf32> -> vector<8x128xf32>
      %c0_17 = arith.constant 0 : index
      %c0_18 = arith.constant 0 : index
      %c0_19 = arith.constant 0 : index
      %27 = vector.load %arg7[%c0_17, %c0_18, %c0_19] : memref<1x8x128xf32, #tpu.memory_space<vmem>>, vector<1x8x128xf32>
      %28 = vector.shape_cast %27 : vector<1x8x128xf32> to vector<8x128xf32>
      %29 = vector.shape_cast %26 : vector<8x128xf32> to vector<1x8x128xf32>
      tpu.vector_store %arg7[%c0_17, %c0_18, %c0_19], %29 {strides = array<i32>} : memref<1x8x128xf32, #tpu.memory_space<vmem>>, vector<1x8x128xf32>,
    } else {
    }
    return
  }
  func.func @transform_0(%arg0: i32, %arg1: i32) -> (i32, i32) {
    %c0_i32 = arith.constant 0 : i32
    return %arg0, %arg1 : i32, i32
  }
  func.func @transform_1(%arg0: i32, %arg1: i32) -> (i32, i32) {
    %c0_i32 = arith.constant 0 : i32
    %c0_i32_0 = arith.constant 0 : i32
    %c0_i32_1 = arith.constant 0 : i32
    return %c0_i32, %c0_i32_0 : i32, i32
  }
  func.func @transform_2(%arg0: i32, %arg1: i32) -> (i32, i32) {
    %c0_i32 = arith.constant 0 : i32
    %c0_i32_0 = arith.constant 0 : i32
    return %arg0, %c0_i32 : i32, i32
  }
  func.func @transform_3(%arg0: i32, %arg1: i32) -> i32 {
    %c0_i32 = arith.constant 0 : i32
    %c0_i32_0 = arith.constant 0 : i32
    return %c0_i32 : i32
  }
  func.func @transform_4(%arg0: i32, %arg1: i32) -> (i32, i32) {
    %c0_i32 = arith.constant 0 : i32
    %c0_i32_0 = arith.constant 0 : i32
    return %c0_i32, %arg0 : i32, i32
  }
  func.func @transform_5(%arg0: i32, %arg1: i32) -> (i32, i32, i32) {
    %c0_i32 = arith.constant 0 : i32
    %c0_i32_0 = arith.constant 0 : i32
    %c0_i32_1 = arith.constant 0 : i32
    return %arg0, %c0_i32, %c0_i32_0 : i32, i32, i32
  }
}

module attributes {stable_mosaic.version = 11 : i64} {
  func.func @feat_kernel(%arg0: i32, %arg1: memref<128x16xf32, #tpu.memory_space<vmem>>, %arg2: memref<16x128xf32, #tpu.memory_space<vmem>>, %arg3: memref<1x128xf32, #tpu.memory_space<vmem>>, %arg4: memref<128x128xf32, #tpu.memory_space<vmem>>, %arg5: memref<1x128xf32, #tpu.memory_space<vmem>>, %arg6: memref<128x128xbf16, #tpu.memory_space<vmem>>) attributes {dimension_semantics = [#tpu.dimension_semantics<parallel>], iteration_bounds = array<i64: 2>, scalar_prefetch = 0 : i64, scratch_operands = 0 : i64, tpu.core_type = #tpu.core_type<tc>, window_params = [{transform_indices = @transform_0, window_bounds = array<i64: 128, 16>}, {pipeline_mode = #tpu.pipeline_mode<synchronous>, transform_indices = @transform_1, window_bounds = array<i64: 16, 128>}, {pipeline_mode = #tpu.pipeline_mode<synchronous>, transform_indices = @transform_2, window_bounds = array<i64: 1, 128>}, {pipeline_mode = #tpu.pipeline_mode<synchronous>, transform_indices = @transform_3, window_bounds = array<i64: 128, 128>}, {pipeline_mode = #tpu.pipeline_mode<synchronous>, transform_indices = @transform_4, window_bounds = array<i64: 1, 128>}, {transform_indices = @transform_5, window_bounds = array<i64: 128, 128>}]} {
    %c0 = arith.constant 0 : index
    %c0_0 = arith.constant 0 : index
    %0 = vector.load %arg1[%c0, %c0_0] : memref<128x16xf32, #tpu.memory_space<vmem>>, vector<128x16xf32>
    %c0_1 = arith.constant 0 : index
    %c0_2 = arith.constant 0 : index
    %1 = vector.load %arg2[%c0_1, %c0_2] : memref<16x128xf32, #tpu.memory_space<vmem>>, vector<16x128xf32>
    %cst = arith.constant dense<0.000000e+00> : vector<128x128xf32>
    %2 = tpu.matmul %0, %1, %cst {dimension_numbers = #tpu.dot_dimension_numbers<[1], [0], [0], [1], [0, 0, 1, 1], [], []>} : vector<128x16xf32>, vector<16x128xf32>, vector<128x128xf32> -> vector<128x128xf32>
    %c0_3 = arith.constant 0 : index
    %c0_4 = arith.constant 0 : index
    %3 = vector.load %arg3[%c0_3, %c0_4] : memref<1x128xf32, #tpu.memory_space<vmem>>, vector<1x128xf32>
    %4 = vector.broadcast %3 : vector<1x128xf32> to vector<128x128xf32>
    %5 = arith.addf %2, %4 : vector<128x128xf32>
    %cst_5 = arith.constant 0.000000e+00 : f32
    %6 = vector.broadcast %cst_5 : f32 to vector<128x128xf32>
    %7 = arith.maximumf %5, %6 : vector<128x128xf32>
    %c0_6 = arith.constant 0 : index
    %c0_7 = arith.constant 0 : index
    %8 = vector.load %arg4[%c0_6, %c0_7] : memref<128x128xf32, #tpu.memory_space<vmem>>, vector<128x128xf32>
    %cst_8 = arith.constant dense<0.000000e+00> : vector<128x128xf32>
    %9 = tpu.matmul %7, %8, %cst_8 {dimension_numbers = #tpu.dot_dimension_numbers<[1], [0], [0], [1], [0, 0, 1, 1], [], []>} : vector<128x128xf32>, vector<128x128xf32>, vector<128x128xf32> -> vector<128x128xf32>
    %c0_9 = arith.constant 0 : index
    %c0_10 = arith.constant 0 : index
    %10 = vector.load %arg5[%c0_9, %c0_10] : memref<1x128xf32, #tpu.memory_space<vmem>>, vector<1x128xf32>
    %11 = vector.broadcast %10 : vector<1x128xf32> to vector<128x128xf32>
    %12 = arith.addf %9, %11 : vector<128x128xf32>
    %13 = arith.truncf %12 : vector<128x128xf32> to vector<128x128xbf16>
    %c0_11 = arith.constant 0 : index
    %c0_12 = arith.constant 0 : index
    %14 = vector.load %arg6[%c0_11, %c0_12] : memref<128x128xbf16, #tpu.memory_space<vmem>>, vector<128x128xbf16>
    tpu.vector_store %arg6[%c0_11, %c0_12], %13 {strides = array<i32>} : memref<128x128xbf16, #tpu.memory_space<vmem>>, vector<128x128xbf16>,
    return
  }
  func.func @transform_0(%arg0: i32) -> (i32, i32) {
    %c0_i32 = arith.constant 0 : i32
    %c0_i32_0 = arith.constant 0 : i32
    return %arg0, %c0_i32 : i32, i32
  }
  func.func @transform_1(%arg0: i32) -> (i32, i32) {
    %c0_i32 = arith.constant 0 : i32
    %c0_i32_0 = arith.constant 0 : i32
    %c0_i32_1 = arith.constant 0 : i32
    return %c0_i32, %c0_i32_0 : i32, i32
  }
  func.func @transform_2(%arg0: i32) -> (i32, i32) {
    %c0_i32 = arith.constant 0 : i32
    %c0_i32_0 = arith.constant 0 : i32
    %c0_i32_1 = arith.constant 0 : i32
    return %c0_i32, %c0_i32_0 : i32, i32
  }
  func.func @transform_3(%arg0: i32) -> (i32, i32) {
    %c0_i32 = arith.constant 0 : i32
    %c0_i32_0 = arith.constant 0 : i32
    %c0_i32_1 = arith.constant 0 : i32
    return %c0_i32, %c0_i32_0 : i32, i32
  }
  func.func @transform_4(%arg0: i32) -> (i32, i32) {
    %c0_i32 = arith.constant 0 : i32
    %c0_i32_0 = arith.constant 0 : i32
    %c0_i32_1 = arith.constant 0 : i32
    return %c0_i32, %c0_i32_0 : i32, i32
  }
  func.func @transform_5(%arg0: i32) -> (i32, i32) {
    %c0_i32 = arith.constant 0 : i32
    %c0_i32_0 = arith.constant 0 : i32
    return %arg0, %c0_i32 : i32, i32
  }
}

module attributes {stable_mosaic.version = 11 : i64} {
  func.func @prop_kernel(%arg0: i32, %arg1: i32, %arg2: memref<128x128xi8, #tpu.memory_space<vmem>>, %arg3: memref<256x128xbf16, #tpu.memory_space<vmem>>, %arg4: memref<128x128xbf16, #tpu.memory_space<vmem>>, %arg5: memref<1xf32, #tpu.memory_space<smem>>, %arg6: memref<128x128xbf16, #tpu.memory_space<vmem>>, %arg7: memref<128x128xf32, #tpu.memory_space<vmem>>) attributes {dimension_semantics = [#tpu.dimension_semantics<parallel>, #tpu.dimension_semantics<arbitrary>], iteration_bounds = array<i64: 2, 2>, scalar_prefetch = 0 : i64, scratch_operands = 1 : i64, tpu.core_type = #tpu.core_type<tc>, window_params = [{transform_indices = @transform_0, window_bounds = array<i64: 128, 128>}, {pipeline_mode = #tpu.pipeline_mode<synchronous>, transform_indices = @transform_1, window_bounds = array<i64: 256, 128>}, {transform_indices = @transform_2, window_bounds = array<i64: 128, 128>}, {transform_indices = @transform_3, window_bounds = array<i64: 1>}, {transform_indices = @transform_4, window_bounds = array<i64: 128, 128>}]} {
    %c0_i32 = arith.constant 0 : i32
    %0 = arith.cmpi eq, %arg1, %c0_i32 : i32
    %1 = arith.extui %0 : i1 to i32
    %c0_i32_0 = arith.constant 0 : i32
    %2 = arith.cmpi ne, %1, %c0_i32_0 : i32
    scf.if %2 {
      %cst_8 = arith.constant 0.000000e+00 : f32
      %16 = vector.broadcast %cst_8 : f32 to vector<128x128xf32>
      %c0_9 = arith.constant 0 : index
      %c0_10 = arith.constant 0 : index
      %17 = vector.load %arg7[%c0_9, %c0_10] : memref<128x128xf32, #tpu.memory_space<vmem>>, vector<128x128xf32>
      tpu.vector_store %arg7[%c0_9, %c0_10], %16 {strides = array<i32>} : memref<128x128xf32, #tpu.memory_space<vmem>>, vector<128x128xf32>,
    } else {
    }
    %c0 = arith.constant 0 : index
    %c0_1 = arith.constant 0 : index
    %3 = vector.load %arg2[%c0, %c0_1] : memref<128x128xi8, #tpu.memory_space<vmem>>, vector<128x128xi8>
    %4 = arith.sitofp %3 : vector<128x128xi8> to vector<128x128xbf16>
    %c0_2 = arith.constant 0 : index
    %c0_3 = arith.constant 0 : index
    %5 = vector.load %arg7[%c0_2, %c0_3] : memref<128x128xf32, #tpu.memory_space<vmem>>, vector<128x128xf32>
    %c128_i32 = arith.constant 128 : i32
    %6 = arith.muli %arg1, %c128_i32 : i32
    %7 = tpu.assume_multiple %6, 128 : i32
    %8 = arith.index_cast %7 : i32 to index
    %c0_4 = arith.constant 0 : index
    %9 = vector.load %arg3[%8, %c0_4] : memref<256x128xbf16, #tpu.memory_space<vmem>>, vector<128x128xbf16>
    %cst = arith.constant dense<0.000000e+00> : vector<128x128xf32>
    %10 = tpu.matmul %4, %9, %cst {dimension_numbers = #tpu.dot_dimension_numbers<[1], [0], [0], [1], [0, 0, 1, 1], [], []>} : vector<128x128xbf16>, vector<128x128xbf16>, vector<128x128xf32> -> vector<128x128xf32>
    %11 = arith.addf %5, %10 : vector<128x128xf32>
    %c0_5 = arith.constant 0 : index
    %c0_6 = arith.constant 0 : index
    %12 = vector.load %arg7[%c0_5, %c0_6] : memref<128x128xf32, #tpu.memory_space<vmem>>, vector<128x128xf32>
    tpu.vector_store %arg7[%c0_5, %c0_6], %11 {strides = array<i32>} : memref<128x128xf32, #tpu.memory_space<vmem>>, vector<128x128xf32>,
    %c1_i32 = arith.constant 1 : i32
    %13 = arith.cmpi eq, %arg1, %c1_i32 : i32
    %14 = arith.extui %13 : i1 to i32
    %c0_i32_7 = arith.constant 0 : i32
    %15 = arith.cmpi ne, %14, %c0_i32_7 : i32
    scf.if %15 {
      %c0_8 = arith.constant 0 : index
      %c0_9 = arith.constant 0 : index
      %16 = vector.load %arg7[%c0_8, %c0_9] : memref<128x128xf32, #tpu.memory_space<vmem>>, vector<128x128xf32>
      %c0_10 = arith.constant 0 : index
      %17 = memref.load %arg5[%c0_10] : memref<1xf32, #tpu.memory_space<smem>>
      %18 = vector.broadcast %17 : f32 to vector<128x128xf32>
      %19 = arith.mulf %16, %18 : vector<128x128xf32>
      %c0_11 = arith.constant 0 : index
      %c0_12 = arith.constant 0 : index
      %20 = vector.load %arg4[%c0_11, %c0_12] : memref<128x128xbf16, #tpu.memory_space<vmem>>, vector<128x128xbf16>
      %21 = arith.extf %20 : vector<128x128xbf16> to vector<128x128xf32>
      %cst_13 = arith.constant 1.000000e-01 : f32
      %22 = vector.broadcast %cst_13 : f32 to vector<128x128xf32>
      %23 = arith.mulf %22, %21 : vector<128x128xf32>
      %24 = arith.addf %19, %23 : vector<128x128xf32>
      %25 = arith.truncf %24 : vector<128x128xf32> to vector<128x128xbf16>
      %c0_14 = arith.constant 0 : index
      %c0_15 = arith.constant 0 : index
      %26 = vector.load %arg6[%c0_14, %c0_15] : memref<128x128xbf16, #tpu.memory_space<vmem>>, vector<128x128xbf16>
      tpu.vector_store %arg6[%c0_14, %c0_15], %25 {strides = array<i32>} : memref<128x128xbf16, #tpu.memory_space<vmem>>, vector<128x128xbf16>,
    } else {
    }
    return
  }
  func.func @transform_0(%arg0: i32, %arg1: i32) -> (i32, i32) {
    %c0_i32 = arith.constant 0 : i32
    return %arg0, %arg1 : i32, i32
  }
  func.func @transform_1(%arg0: i32, %arg1: i32) -> (i32, i32) {
    %c0_i32 = arith.constant 0 : i32
    %c0_i32_0 = arith.constant 0 : i32
    %c0_i32_1 = arith.constant 0 : i32
    return %c0_i32, %c0_i32_0 : i32, i32
  }
  func.func @transform_2(%arg0: i32, %arg1: i32) -> (i32, i32) {
    %c0_i32 = arith.constant 0 : i32
    %c0_i32_0 = arith.constant 0 : i32
    return %arg0, %c0_i32 : i32, i32
  }
  func.func @transform_3(%arg0: i32, %arg1: i32) -> i32 {
    %c0_i32 = arith.constant 0 : i32
    %c0_i32_0 = arith.constant 0 : i32
    return %c0_i32 : i32
  }
  func.func @transform_4(%arg0: i32, %arg1: i32) -> (i32, i32) {
    %c0_i32 = arith.constant 0 : i32
    %c0_i32_0 = arith.constant 0 : i32
    return %arg0, %c0_i32 : i32, i32
  }
}

</mosaic_0001>

<bundles_post_ra>
// kernel: appnp2net_forward.5
= control target key start
LH: loop header
LB: loop body
LE: loop exit
PB: predicated region body
PF: predicated region fallthrough
CT: control target
= control target key end

     0   :  { %s1375_s0 = inlined_call_operand.vmem [shape: s8[256,256], index: 0, kind: input, shape index: {}]   ;;  %s1376_s1 = inlined_call_operand.vmem [shape: bf16[256,128], index: 1, kind: input, shape index: {}]   ;;  %s1377_s2 = inlined_call_operand.vmem [shape: bf16[256,128], index: 2, kind: input, shape index: {}]   ;;  %s1378_s3 = inlined_call_operand.<no memory space> [shape: f32[1], index: 3, kind: input, shape index: {}]   ;;  %s1379_s4 = inlined_call_operand.vmem [shape: f32[8,256], index: 4, kind: input, shape index: {}]   ;;  %s1380_s5 = inlined_call_operand.vmem [shape: f32[2,8,128], index: 5, kind: output, shape index: {}]  }
   0x1   :  { %10 = sst [smem:[#allocation3]] %s1378_s3 }
   0x2   :  { %s1215_s20 = smov 0   ;;  %s1217_s21 = smov 0  }
   0x3   :  { %s1219_s22 = smov 0   ;;  %s1221_s23 = smov 0  }
   0x4   :  { %s1223_s24 = smov 0   ;;  %s1225_s25 = smov 0  }
   0x5   :  { %s1227_s26 = smov 0  }
   0x6 LB: > { %s25_s3 = sadd.s32 1, %s1168_s24  ;;  %s28_s27 = sadd.s32 1, %s1172_s25  ;;  %s1176_s26 = sphi %s1227_s26, %s16_s26   ;;  %s1172_s25 = sphi %s1225_s25, %s1386_s25   ;;  %s1168_s24 = sphi %s1223_s24, %s1385_s24   ;;  %s1164_s23 = sphi %s1221_s23, %s1384_s23   ;;  %s1160_s22 = sphi %s1219_s22, %s1383_s22   ;;  %s1156_s21 = sphi %s1217_s21, %s1382_s21   ;;  %s1152_s20 = sphi %s1215_s20, %s1381_s20  }
   0x7   : > { %p26_p0 = scmp.ge.s32.totalorder %s25_s3, 2  ;;  %p44_p1 = scmp.ne.s32.totalorder %s1156_s21, %s1152_s20 }
   0x8   : > { %p45_p2 = scmp.eq.s32.totalorder %s1176_s26, 0  ;;  %s37_s6 = sadd.s32 1, %s1156_s21 }
   0x9   : > { %s1388_s3 = smov (%p26_p0, %s25_s3), 0  ;;  %s1390_s27 = smov (!%p26_p0, %s28_s27), %s1172_s25 }
   0xa   : > { %p46_p3 = por %p45_p2, %p44_p1  ;;  %p30_p4 = scmp.ge.s32.totalorder %s1390_s27, 2 }
   0xb   : > { %s33_s28 = ssub.s32 %s1168_s24, %s1388_s3  ;;  %p849_p6 = scmp.ge.s32.totalorder %s1176_s26, 4 }
   0xc   : > { %s1392_s27 = smov (%p30_p4, %s1390_s27), 0 }
   0xd   : > { %s32_s29 = ssub.s32 %s1172_s25, %s1392_s27  ;;  %196 = sbr.rel (%p849_p6) target bundleno = 28 (0x1c), region = 24 }
   0xe   : > { %s34_s30 = sor.u32 %s33_s28, %s32_s29 }
   0xf   : > { %p35_p5 = scmp.eq.s32.totalorder %s34_s30, 0 }
  0x11   : > { %s1266_s7 = scalar_select %p35_p5, %s1156_s21, %s37_s6  }
  0x14   : > { %199 = sbr.rel (!%p46_p3) target bundleno = 28 (0x1c), region = 28  ;;  %s201_s8 = sand.u32 (%p46_p3), 1, %s1156_s21  }
  0x15   : > { %s874_s9 = sshll.u32 (%p46_p3), %s1172_s25, 3  ;;  %s850_s10 = sshll.u32 (%p46_p3), %s201_s8, 5 }
  0x16   : > { %s206_s11 = sadd.s32 (%p46_p3), %s1168_s24, %s874_s9  ;;  %s203_s16 = scalar_lea.vmem (%p46_p3), [#allocation4], %s850_s10 }
  0x17   : > { %s853_s12 = sshll.u32 (%p46_p3), %s206_s11, 3 }
  0x18   : > { %s208_s15 = scalar_lea.vmem (%p46_p3), %s1375_s0, %s853_s12 }
  0x19   : > { %v242_v0 = vld [vmem:[%s208_s15] sm:$0xff] (%p46_p3)  ;;  %v244_v1 = vld [vmem:[%s208_s15 + $0x10] sm:$0xff] (%p46_p3) }
  0x1a   : > { %v246_v2 = vld [vmem:[%s208_s15 + $0x20] sm:$0xff] (%p46_p3)  ;;  %243 = vst [vmem:[%s203_s16] sm:$0xff] (%p46_p3), %v242_v0  ;;  %245 = vst [vmem:[%s203_s16 + $0x8] sm:$0xff] (%p46_p3), %v244_v1  ;;  %v248_v3 = vld [vmem:[%s208_s15 + $0x30] sm:$0xff] (%p46_p3) }
  0x1b   : > { %247 = vst [vmem:[%s203_s16 + $0x10] sm:$0xff] %v246_v2  ;;  %249 = vst [vmem:[%s203_s16 + $0x18] sm:$0xff] %v248_v3 }
  0x1c PF: > { %p854_p7 = scmp.ge.s32.totalorder %s1176_s26, 1  ;;  %p270_p8 = scmp.lt.s32.totalorder %s1176_s26, 5 }
  0x1e   : > { %p271_p9 = pnand %p854_p7, %p270_p8 }
  0x1f   : > { %s277_s17 = sand.u32 (!%p271_p9), 1, %s1152_s20   ;;  %s856_s18 = sshll.u32 (!%p271_p9), %s1164_s23, 4 }
  0x20   : > { %274 = sbr.rel (%p271_p9) target bundleno = 561 (0x231), region = 74  ;;  %s855_s19 = sshll.u32 (!%p271_p9), %s277_s17, 5 }
  0x21   : > { %p314_p10 = scmp.lt.s32.totalorder (!%p271_p9), %s856_s18, 31  ;;  %p319_p11 = scmp.lt.s32.totalorder (!%p271_p9), %s1164_s23, 1 }
  0x22   : > { %s1296_s14 = scalar_lea.vmem (!%p271_p9), [#allocation4], %s855_s19  ;;  %p860_p12 = scmp.ne.s32.totalorder (!%p271_p9), %s1160_s22, 0 }
  0x27   : > { %s1394_s18 = smov (!%p314_p10, %s856_s18), 31  ;;  %s1396_s23 = smov (!%p319_p11, %s1164_s23), 1 }
  0x28   : > { %s857_s28 = sshll.u32 %s1394_s18, 2  ;;  %s858_s8 = sshll.u32 %s1396_s23, 3  ;;  %v1178_v4 = vmov (!%p860_p12), 0.0  }
  0x29   : > { %s1284_s6 = scalar_lea.vmem %s1377_s2, %s857_s28  ;;  %s1289_s11 = scalar_lea.vmem %s1379_s4, %s858_s8  ;;  %332 = vst [vmem:[#allocation2] sm:$0xff] (!%p860_p12), %v1178_v4  ;;  %333 = vst [vmem:[#allocation2 + $0x8] sm:$0xff] (!%p860_p12), %v1178_v4 }
  0x2a   : > { %s1294_s13 = scalar_lea.vmem %s1380_s5, %s858_s8  ;;  %331 = sbr.rel (%p860_p12) target bundleno = 49 (0x31), region = 82  ;;  %334 = vst [vmem:[#allocation2 + $0x10] sm:$0xff] (!%p860_p12), %v1178_v4  ;;  %335 = vst [vmem:[#allocation2 + $0x18] sm:$0xff] (!%p860_p12), %v1178_v4 }
  0x2b   : > { %336 = vst [vmem:[#allocation2 + $0x20] sm:$0xff] (!%p860_p12), %v1178_v4  ;;  %337 = vst [vmem:[#allocation2 + $0x28] sm:$0xff] (!%p860_p12), %v1178_v4 }
  0x2c   : > { %338 = vst [vmem:[#allocation2 + $0x30] sm:$0xff] (!%p860_p12), %v1178_v4  ;;  %339 = vst [vmem:[#allocation2 + $0x38] sm:$0xff] (!%p860_p12), %v1178_v4 }
  0x2d   : > { %340 = vst [vmem:[#allocation2 + $0x40] sm:$0xff] (!%p860_p12), %v1178_v4  ;;  %341 = vst [vmem:[#allocation2 + $0x48] sm:$0xff] (!%p860_p12), %v1178_v4 }
  0x2e   : > { %342 = vst [vmem:[#allocation2 + $0x50] sm:$0xff] (!%p860_p12), %v1178_v4  ;;  %343 = vst [vmem:[#allocation2 + $0x58] sm:$0xff] (!%p860_p12), %v1178_v4 }
  0x2f   : > { %344 = vst [vmem:[#allocation2 + $0x60] sm:$0xff] (!%p860_p12), %v1178_v4  ;;  %345 = vst [vmem:[#allocation2 + $0x68] sm:$0xff] (!%p860_p12), %v1178_v4 }
  0x30   : > { %346 = vst [vmem:[#allocation2 + $0x70] sm:$0xff] (!%p860_p12), %v1178_v4  ;;  %347 = vst [vmem:[#allocation2 + $0x78] sm:$0xff] (!%p860_p12), %v1178_v4 }
  0x31 PF: > { %s861_s23 = sshll.u32 %s1160_s22, 7  ;;  %v348_v5 = vld [vmem:[%s1296_s14] sm:$0xff]  ;;  %v350_v6 = vld [vmem:[%s1296_s14 + $0x10] sm:$0xff]  ;;  %v349_v17 = vld [vmem:[%s1296_s14 + $0x8] sm:$0xff]  ;;  %p871_p13 = scmp.ne.s32.totalorder %s1160_s22, 1 }
  0x32   : > { %s377_s15 = sshra.s32 %s861_s23, 3  ;;  %v352_v7 = vunpack.c.l.s8.bf16 %v348_v5  ;;  %v356_v8 = vunpack.c.l.s8.bf16 %v350_v6  ;;  %v351_v18 = vld [vmem:[%s1296_s14 + $0x18] sm:$0xff]  ;;  %v353_v19 = vunpack.c.h.s8.bf16 %v348_v5  ;;  %v357_v20 = vunpack.c.h.s8.bf16 %v350_v6  ;;  %v362_v25 = vld [vmem:[#allocation2 + $0x10] sm:$0xff]  ;;  %v360_v27 = vld [vmem:[#allocation2] sm:$0xff]  ;;  %s594_s28 = sld [smem:[#allocation3]] (!%p871_p13) }
  0x33   : > { %s862_s16 = sshll.u32 %s377_s15, 2  ;;  %v354_v21 = vunpack.c.l.s8.bf16 %v349_v17  ;;  %v358_v22 = vunpack.c.l.s8.bf16 %v351_v18  ;;  %v355_v23 = vunpack.c.h.s8.bf16 %v349_v17  ;;  %v359_v24 = vunpack.c.h.s8.bf16 %v351_v18  ;;  %v363_v31 = vld [vmem:[#allocation2 + $0x18] sm:$0xff]  ;;  %v361_v37 = vld [vmem:[#allocation2 + $0x8] sm:$0xff]  ;;  %v366_v49 = vld [vmem:[#allocation2 + $0x30] sm:$0xff] }
  0x34   : > { %s1305_s19 = scalar_lea.vmem %s1376_s1, %s862_s16  ;;  %963 = vmatprep.mubr.bf16.mxu0 %v352_v7  ;;  %971 = vmatprep.mubr.bf16.mxu1 %v356_v8  ;;  %v368_v28 = vld [vmem:[#allocation2 + $0x40] sm:$0xff]  ;;  %v369_v38 = vld [vmem:[#allocation2 + $0x48] sm:$0xff]  ;;  %v367_v55 = vld [vmem:[#allocation2 + $0x38] sm:$0xff]  ;;  %vm1180_vm0 = vmmov (!%p871_p13), 0   ;;  %v1181_v17 = vmov (!%p871_p13), 0.0  }
  0x35   : > { %v1114_v9 = vld [vmem:[%s1305_s19] sm:$0xff]   ;;  %v1115_v10 = vld [vmem:[%s1305_s19 + $0x8] sm:$0xff]   ;;  %v1116_v11 = vld [vmem:[%s1305_s19 + $0x10] sm:$0xff]  }
  0x36   : > { %947 = vmatprep.subr.bf16.mxu0 %v1114_v9  ;;  %1038 = vmatprep.subr.bf16.mxu1 %v1114_v9  ;;  %v1117_v12 = vld [vmem:[%s1305_s19 + $0x18] sm:$0xff]   ;;  %v1118_v13 = vld [vmem:[%s1305_s19 + $0x20] sm:$0xff]   ;;  %v1119_v14 = vld [vmem:[%s1305_s19 + $0x28] sm:$0xff]  }
  0x37   : > { %948 = vmatpush3.bf16.msra.mxu0 %v1114_v9  ;;  %1046 = vmatpush3.bf16.msra.mxu1 %v1114_v9  ;;  %v1120_v15 = vld [vmem:[%s1305_s19 + $0x30] sm:$0xff]   ;;  %v1121_v16 = vld [vmem:[%s1305_s19 + $0x38] sm:$0xff]   ;;  %v364_v51 = vld [vmem:[#allocation2 + $0x20] sm:$0xff] }
  0x38   : > { %949 = vmatprep.subr.bf16.mxu0 %v1115_v10  ;;  %1039 = vmatprep.subr.bf16.mxu1 %v1115_v10  ;;  %v370_v26 = vld [vmem:[#allocation2 + $0x50] sm:$0xff]  ;;  %v371_v32 = vld [vmem:[#allocation2 + $0x58] sm:$0xff]  ;;  %v372_v52 = vld [vmem:[#allocation2 + $0x60] sm:$0xff] }
  0x39   : > { %v374_v50 = vld [vmem:[#allocation2 + $0x70] sm:$0xff]  ;;  %v375_v56 = vld [vmem:[#allocation2 + $0x78] sm:$0xff]  ;;  %v365_v61 = vld [vmem:[#allocation2 + $0x28] sm:$0xff] }
  0x3a   : > { %v373_v62 = vld [vmem:[#allocation2 + $0x68] sm:$0xff]  ;;  %v876_v9 = vld [vmem:[%s1284_s6] sm:$0xff] (!%p871_p13)  }
  0x3b   : > { %950 = vmatpush3.bf16.msra.mxu0 %v1115_v10  ;;  %1047 = vmatpush3.bf16.msra.mxu1 %v1115_v10  ;;  %v1179_v10 = vmov (!%p871_p13), 0.0|0.0  }
  0x3c   : > { %951 = vmatprep.subr.bf16.mxu0 %v1116_v11  ;;  %1040 = vmatprep.subr.bf16.mxu1 %v1116_v11 }
  0x3f   : > { %952 = vmatpush3.bf16.msra.mxu0 %v1116_v11  ;;  %1048 = vmatpush3.bf16.msra.mxu1 %v1116_v11  ;;  %v877_v11 = vunpack.c.l.bf16 (!%p871_p13), %v876_v9 }
  0x40   : > { %953 = vmatprep.subr.bf16.mxu0 %v1117_v12  ;;  %1041 = vmatprep.subr.bf16.mxu1 %v1117_v12 }
  0x43   : > { %954 = vmatpush3.bf16.msra.mxu0 %v1117_v12  ;;  %1049 = vmatpush3.bf16.msra.mxu1 %v1117_v12  ;;  %v878_v12 = vunpack.c.h.bf16 (!%p871_p13), %v876_v9 }
  0x44   : > { %955 = vmatprep.subr.bf16.mxu0 %v1118_v13  ;;  %1042 = vmatprep.subr.bf16.mxu1 %v1118_v13 }
  0x47   : > { %956 = vmatpush3.bf16.msra.mxu0 %v1118_v13  ;;  %1050 = vmatpush3.bf16.msra.mxu1 %v1118_v13  ;;  %v907_v13 = vld [vmem:[%s1284_s6 + $0x8] sm:$0xff] (!%p871_p13)  }
  0x48   : > { %957 = vmatprep.subr.bf16.mxu0 %v1119_v14  ;;  %1043 = vmatprep.subr.bf16.mxu1 %v1119_v14 }
  0x4b   : > { %958 = vmatpush3.bf16.msra.mxu0 %v1119_v14  ;;  %1051 = vmatpush3.bf16.msra.mxu1 %v1119_v14  ;;  %v881_v14 = vunpack.c.l.bf16 (!%p871_p13), %v907_v13 }
  0x4c   : > { %959 = vmatprep.subr.bf16.mxu0 %v1120_v15  ;;  %1044 = vmatprep.subr.bf16.mxu1 %v1120_v15 }
  0x4f   : > { %960 = vmatpush3.bf16.msra.mxu0 %v1120_v15  ;;  %1052 = vmatpush3.bf16.msra.mxu1 %v1120_v15  ;;  %v882_v15 = vunpack.c.h.bf16 (!%p871_p13), %v907_v13 }
  0x50   : > { %961 = vmatprep.subr.bf16.mxu0 %v1121_v16  ;;  %1045 = vmatprep.subr.bf16.mxu1 %v1121_v16 }
  0x53   : > { %962 = vmatpush3.bf16.msra.mxu0 %v1121_v16  ;;  %1053 = vmatpush3.bf16.msra.mxu1 %v1121_v16  ;;  %v908_v16 = vld [vmem:[%s1284_s6 + $0x10] sm:$0xff] (!%p871_p13)  }
  0x54   : > { %1014 = vmatprep.subr.bf16.mxu0 (!%p871_p13), %v1179_v10 }
  0x56   : > { %964 = vmatmul.mubr.bf16.vlgmr.msra.gmra.mrb[0].mxu0 %v353_v19  ;;  %972 = vmatmul.mubr.bf16.vlgmr.msra.gmra.mrb[0].mxu1 %v357_v20 }
  0x57   : > { %967 = vmatprep.mubr.bf16.mxu0 %v354_v21  ;;  %975 = vmatprep.mubr.bf16.mxu1 %v358_v22  ;;  %v885_v21 = vunpack.c.l.bf16 (!%p871_p13), %v908_v16  ;;  %v886_v22 = vunpack.c.h.bf16 (!%p871_p13), %v908_v16 }
  0x5e   : > { %968 = vmatmul.mubr.bf16.gmra.mrb[4].mxu0 %v355_v23  ;;  %976 = vmatmul.mubr.bf16.gmra.mrb[4].mxu1 %v359_v24  ;;  %v644_v23 = vmul.f32 (!%p871_p13), 0.1, %v877_v11  ;;  %v645_v24 = vmul.f32 (!%p871_p13), 0.1, %v878_v12 }
  0x5f   : > { %1011 = vmatprep.mubr.msk.f32.mxu0 (!%p871_p13), %vm1180_vm0, %v1181_v17 }
 0x129   : > { %v965_v29 = vpop.f32.mrb[0].mxu0  ;;  %v973_v30 = vpop.f32.mrb[0].mxu1 }
 0x12a   : > { %v544_v33 = vadd.f32 %v965_v29, %v362_v25  ;;  %v552_v34 = vadd.f32 %v973_v30, %v370_v26  ;;  %v479_v35 = vpop.f32.mrb[1].mxu0  ;;  %v511_v36 = vpop.f32.mrb[1].mxu1  ;;  %v909_v30 = vld [vmem:[%s1284_s6 + $0x18] sm:$0xff] (!%p871_p13)  }
 0x12b   : > { %v542_v39 = vadd.f32 %v479_v35, %v360_v27  ;;  %v550_v40 = vadd.f32 %v511_v36, %v368_v28  ;;  %v966_v41 = vpop.f32.mrb[2].mxu0  ;;  %v974_v42 = vpop.f32.mrb[2].mxu1  ;;  %v646_v27 = vmul.f32 (!%p871_p13), 0.1, %v881_v14  ;;  %v647_v28 = vmul.f32 (!%p871_p13), 0.1, %v882_v15 }
 0x12c   : > { %560 = vst [vmem:[#allocation2 + $0x10] sm:$0xff] %v544_v33  ;;  %568 = vst [vmem:[#allocation2 + $0x50] sm:$0xff] %v552_v34  ;;  %v545_v43 = vadd.f32 %v966_v41, %v363_v31  ;;  %v553_v44 = vadd.f32 %v974_v42, %v371_v32  ;;  %v482_v45 = vpop.f32.mrb[3].mxu0  ;;  %v514_v46 = vpop.f32.mrb[3].mxu1  ;;  %v1323_v31 = vstv (!%p871_p13), %s594_s28  ;;  %v648_v32 = vmul.f32 (!%p871_p13), 0.1, %v885_v21 }
 0x12d   : > { %558 = vst [vmem:[#allocation2] sm:$0xff] %v542_v39  ;;  %566 = vst [vmem:[#allocation2 + $0x40] sm:$0xff] %v550_v40  ;;  %v543_v47 = vadd.f32 %v482_v45, %v361_v37  ;;  %v551_v48 = vadd.f32 %v514_v46, %v369_v38  ;;  %v649_v33 = vmul.f32 (!%p871_p13), 0.1, %v886_v22  ;;  %v889_v40 = vunpack.c.l.bf16 (!%p871_p13), %v909_v30  ;;  %v910_v42 = vld [vmem:[%s1284_s6 + $0x20] sm:$0xff] (!%p871_p13)   ;;  %v913_v22 = vld [vmem:[%s1284_s6 + $0x38] sm:$0xff] (!%p871_p13)  }
 0x12e   : > { %561 = vst [vmem:[#allocation2 + $0x18] sm:$0xff] %v545_v43  ;;  %569 = vst [vmem:[#allocation2 + $0x58] sm:$0xff] %v553_v44  ;;  %v890_v41 = vunpack.c.h.bf16 (!%p871_p13), %v909_v30 }
 0x12f   : > { %559 = vst [vmem:[#allocation2 + $0x8] sm:$0xff] %v543_v47  ;;  %567 = vst [vmem:[#allocation2 + $0x48] sm:$0xff] %v551_v48 }
 0x131   : > { %v969_v53 = vpop.f32.mrb[4].mxu0  ;;  %v977_v54 = vpop.f32.mrb[4].mxu1  ;;  %577 = sbr.rel (%p871_p13) target bundleno = 561 (0x231), region = 86 }
 0x132   : > { %v548_v57 = vadd.f32 %v969_v53, %v366_v49  ;;  %v556_v58 = vadd.f32 %v977_v54, %v374_v50  ;;  %v495_v59 = vpop.f32.mrb[5].mxu0  ;;  %v527_v60 = vpop.f32.mrb[5].mxu1  ;;  %v893_v50 = vunpack.c.l.bf16 (!%p871_p13), %v910_v42 }
 0x133   : > { %v546_v63 = vadd.f32 %v495_v59, %v364_v51  ;;  %v554_v0 = vadd.f32 %v527_v60, %v372_v52  ;;  %v970_v1 = vpop.f32.mrb[6].mxu0  ;;  %v978_v2 = vpop.f32.mrb[6].mxu1  ;;  %v580_v20 = vld [vmem:[#allocation2 + $0x10] sm:$0xff] (!%p871_p13)  ;;  %v651_v59 = vmul.f32 (!%p871_p13), 0.1, %v890_v41 }
 0x134   : > { %564 = vst [vmem:[#allocation2 + $0x30] sm:$0xff] %v548_v57  ;;  %572 = vst [vmem:[#allocation2 + $0x70] sm:$0xff] %v556_v58  ;;  %v549_v3 = vadd.f32 %v970_v1, %v367_v55  ;;  %v557_v4 = vadd.f32 %v978_v2, %v375_v56  ;;  %v498_v5 = vpop.f32.mrb[7].mxu0  ;;  %v530_v6 = vpop.f32.mrb[7].mxu1  ;;  %v578_v18 = vld [vmem:[#allocation2] sm:$0xff] (!%p871_p13)  ;;  %v598_v36 = vmul.f32 (!%p871_p13), %v1323_v31, %v580_v20  ;;  %v894_v55 = vunpack.c.h.bf16 (!%p871_p13), %v910_v42  ;;  %v588_v2 = vld [vmem:[#allocation2 + $0x50] sm:$0xff] (!%p871_p13) }
 0x135   : > { %562 = vst [vmem:[#allocation2 + $0x20] sm:$0xff] %v546_v63  ;;  %570 = vst [vmem:[#allocation2 + $0x60] sm:$0xff] %v554_v0  ;;  %v547_v7 = vadd.f32 %v498_v5, %v365_v61  ;;  %v555_v8 = vadd.f32 %v530_v6, %v373_v62  ;;  %v581_v25 = vld [vmem:[#allocation2 + $0x18] sm:$0xff] (!%p871_p13)  ;;  %v596_v34 = vmul.f32 (!%p871_p13), %v1323_v31, %v578_v18  ;;  %v586_v54 = vld [vmem:[#allocation2 + $0x40] sm:$0xff] (!%p871_p13)  ;;  %v650_v58 = vmul.f32 (!%p871_p13), 0.1, %v889_v40 }
 0x136   : > { %565 = vst [vmem:[#allocation2 + $0x38] sm:$0xff] %v549_v3  ;;  %573 = vst [vmem:[#allocation2 + $0x78] sm:$0xff] %v557_v4  ;;  %v579_v19 = vld [vmem:[#allocation2 + $0x8] sm:$0xff] (!%p871_p13)  ;;  %v599_v37 = vmul.f32 (!%p871_p13), %v1323_v31, %v581_v25  ;;  %v662_v45 = vadd.f32 (!%p871_p13), %v646_v27, %v598_v36  ;;  %v604_v62 = vmul.f32 (!%p871_p13), %v1323_v31, %v586_v54  ;;  %v652_v0 = vmul.f32 (!%p871_p13), 0.1, %v893_v50  ;;  %v589_v9 = vld [vmem:[#allocation2 + $0x58] sm:$0xff] (!%p871_p13) }
 0x137   : > { %563 = vst [vmem:[#allocation2 + $0x28] sm:$0xff] %v547_v7  ;;  %571 = vst [vmem:[#allocation2 + $0x68] sm:$0xff] %v555_v8  ;;  %v597_v35 = vmul.f32 (!%p871_p13), %v1323_v31, %v579_v19  ;;  %v660_v43 = vadd.f32 (!%p871_p13), %v644_v23, %v596_v34  ;;  %v587_v60 = vld [vmem:[#allocation2 + $0x48] sm:$0xff] (!%p871_p13)  ;;  %v653_v1 = vmul.f32 (!%p871_p13), 0.1, %v894_v55  ;;  %v912_v8 = vld [vmem:[%s1284_s6 + $0x30] sm:$0xff] (!%p871_p13)   ;;  %v606_v11 = vmul.f32 (!%p871_p13), %v1323_v31, %v588_v2 }
 0x138   : > { %v663_v46 = vadd.f32 %v647_v28, %v599_v37  ;;  %v911_v61 = vld [vmem:[%s1284_s6 + $0x28] sm:$0xff]   ;;  %v605_v63 = vmul.f32 %v1323_v31, %v587_v60  ;;  %v668_v12 = vadd.f32 %v652_v0, %v604_v62  ;;  %v901_v16 = vunpack.c.l.bf16 %v912_v8 }
 0x139   : > { %v661_v44 = vadd.f32 %v645_v24, %v597_v35  ;;  %v897_v3 = vunpack.c.l.bf16 %v911_v61  ;;  %v898_v7 = vunpack.c.h.bf16 %v911_v61  ;;  %v607_v18 = vmul.f32 %v1323_v31, %v589_v9 }
 0x13a   : > { %v1018_v56 = vpack.c.bf16 %v663_v46, %v662_v45  ;;  %v669_v13 = vadd.f32 %v653_v1, %v605_v63  ;;  %v902_v21 = vunpack.c.h.bf16 %v912_v8  ;;  %v656_v27 = vmul.f32 0.1, %v901_v16 }
 0x13b   : > { %v584_v47 = vld [vmem:[#allocation2 + $0x30] sm:$0xff]  ;;  %v1015_v49 = vpack.c.bf16 %v661_v44, %v660_v43  ;;  %v654_v14 = vmul.f32 0.1, %v897_v3  ;;  %v655_v19 = vmul.f32 0.1, %v898_v7  ;;  %v906_v34 = vunpack.c.h.bf16 %v913_v22 }
 0x13c   : > { %v582_v26 = vld [vmem:[#allocation2 + $0x20] sm:$0xff]  ;;  %v602_v52 = vmul.f32 %v1323_v31, %v584_v47  ;;  %v1027_v24 = vpack.c.bf16 %v669_v13, %v668_v12  ;;  %v592_v30 = vld [vmem:[#allocation2 + $0x70] sm:$0xff] }
 0x13d   : > { %v600_v38 = vmul.f32 %v1323_v31, %v582_v26  ;;  %v585_v48 = vld [vmem:[#allocation2 + $0x38] sm:$0xff]  ;;  %1016 = vmatpush3.bf16.msra.mxu0 %v1015_v49  ;;  %v590_v15 = vld [vmem:[#allocation2 + $0x60] sm:$0xff]  ;;  %v670_v25 = vadd.f32 %v654_v14, %v606_v11  ;;  %v671_v28 = vadd.f32 %v655_v19, %v607_v18  ;;  %v610_v36 = vmul.f32 %v1323_v31, %v592_v30 }
 0x13e   : > { %v583_v29 = vld [vmem:[#allocation2 + $0x28] sm:$0xff]  ;;  %v603_v53 = vmul.f32 %v1323_v31, %v585_v48  ;;  %1017 = vmatprep.subr.bf16.mxu0 %v1179_v10  ;;  %v666_v5 = vadd.f32 %v650_v58, %v602_v52  ;;  %v608_v23 = vmul.f32 %v1323_v31, %v590_v15  ;;  %v659_v41 = vmul.f32 0.1, %v906_v34 }
 0x13f   : > { %v601_v39 = vmul.f32 %v1323_v31, %v583_v29  ;;  %v664_v51 = vadd.f32 %v648_v32, %v600_v38  ;;  %v591_v20 = vld [vmem:[#allocation2 + $0x68] sm:$0xff]  ;;  %v657_v29 = vmul.f32 0.1, %v902_v21  ;;  %v593_v32 = vld [vmem:[#allocation2 + $0x78] sm:$0xff]  ;;  %v1030_v38 = vpack.c.bf16 %v671_v28, %v670_v25 }
 0x140   : > { %v667_v6 = vadd.f32 %v651_v59, %v603_v53  ;;  %v609_v26 = vmul.f32 %v1323_v31, %v591_v20  ;;  %v672_v35 = vadd.f32 %v656_v27, %v608_v23  ;;  %v611_v37 = vmul.f32 %v1323_v31, %v593_v32  ;;  %v676_v31 = vld [vmem:[%s1289_s11] sm:$0xff] }
 0x141   : > { %v665_v57 = vadd.f32 %v649_v33, %v601_v39  ;;  %1019 = vmatpush3.bf16.msra.mxu0 %v1018_v56  ;;  %v905_v33 = vunpack.c.l.bf16 %v913_v22 }
 0x142   : > { %1020 = vmatprep.subr.bf16.mxu0 %v1179_v10  ;;  %v1024_v17 = vpack.c.bf16 %v667_v6, %v666_v5  ;;  %v673_v39 = vadd.f32 %v657_v29, %v609_v26  ;;  %v675_v44 = vadd.f32 %v659_v41, %v611_v37 }
 0x143   : > { %v1021_v4 = vpack.c.bf16 %v665_v57, %v664_v51  ;;  %v658_v40 = vmul.f32 0.1, %v905_v33 }
 0x144   : > { %v1033_v42 = vpack.c.bf16 %v673_v39, %v672_v35 }
 0x145   : > { %1022 = vmatpush3.bf16.msra.mxu0 %v1021_v4  ;;  %v674_v43 = vadd.f32 %v658_v40, %v610_v36 }
 0x146   : > { %1023 = vmatprep.subr.bf16.mxu0 %v1179_v10 }
 0x147   : > { %v1036_v45 = vpack.c.bf16 %v675_v44, %v674_v43 }
 0x149   : > { %1025 = vmatpush3.bf16.msra.mxu0 %v1024_v17 }
 0x14a   : > { %1026 = vmatprep.subr.bf16.mxu0 %v1179_v10 }
 0x14d   : > { %1028 = vmatpush3.bf16.msra.mxu0 %v1027_v24 }
 0x14e   : > { %1029 = vmatprep.subr.bf16.mxu0 %v1179_v10 }
 0x151   : > { %1031 = vmatpush3.bf16.msra.mxu0 %v1030_v38 }
 0x152   : > { %1032 = vmatprep.subr.bf16.mxu0 %v1179_v10 }
 0x155   : > { %1034 = vmatpush3.bf16.msra.mxu0 %v1033_v42 }
 0x156   : > { %1035 = vmatprep.subr.bf16.mxu0 %v1179_v10 }
 0x159   : > { %1037 = vmatpush3.bf16.msra.mxu0 %v1036_v45 }
 0x15c   : > { %1012 = vmatmul.mubr.f32.vlgmr.msra.gmra.mrb[0].mxu0 %v676_v31 }
 0x22f   : > { %v743_v46 = vpop.f32.mrb[0].mxu0 }
 0x230   : > { %747 = vst [vmem:[%s1294_s13] sm:$0xff] %v743_v46  ;;  %v1013_v47 = vpop.f32.mrb[1].mxu0 }
 0x231 PF: > { %s16_s26 = sadd.s32 1, %s1176_s26   ;;  %s1381_s20 = smov %s1156_s21 }
 0x232   : > { %p13_p0 = scmp.ge.s32.totalorder %s16_s26, 6   ;;  %s1382_s21 = smov %s1266_s7 }
 0x233   : > { %s1383_s22 = smov %s1168_s24  ;;  %s1384_s23 = smov %s1172_s25 }
 0x234   : > { %s1385_s24 = smov %s1388_s3  ;;  %s1386_s25 = smov %s1392_s27 }
 0x235   :  { %15 = sbr.rel (!%p13_p0) target bundleno = 6 (0x6), region = 128 }

// kernel: appnp2net_forward.3
= control target key start
LH: loop header
LB: loop body
LE: loop exit
PB: predicated region body
PF: predicated region fallthrough
CT: control target
= control target key end

     0   :  { %s1107_s18 = smov 0   ;;  %s1232_s0 = inlined_call_operand.vmem [shape: f32[256,16], index: 0, kind: input, shape index: {}]   ;;  %s1233_s1 = inlined_call_operand.vmem [shape: f32[16,128], index: 1, kind: input, shape index: {}]   ;;  %s1234_s2 = inlined_call_operand.vmem [shape: f32[1,128], index: 2, kind: input, shape index: {}]   ;;  %s1235_s3 = inlined_call_operand.vmem [shape: f32[128,128], index: 3, kind: input, shape index: {}]   ;;  %s1236_s4 = inlined_call_operand.vmem [shape: f32[1,128], index: 4, kind: input, shape index: {}]   ;;  %s1237_s5 = inlined_call_operand.vmem [shape: bf16[256,128], index: 5, kind: output, shape index: {}]  }
   0x1 LB: > { %s767_s19 = sadd.s32 4294967295, %s1075_s18   ;;  %p771_p0 = scmp.ge.s32.totalorder %s1075_s18, 1  ;;  %s1075_s18 = sphi %s1107_s18, %s15_s18  }
   0x2   : > { %p188_p1 = scmp.lt.s32.totalorder %s1075_s18, 3 }
   0x4   : > { %p189_p2 = pnand %p771_p0, %p188_p1 }
   0x5   : > { %v244_v0 = vld [vmem:[%s1233_s1] sm:$0xff] (!%p189_p2)  ;;  %v245_v1 = vld [vmem:[%s1233_s1 + $0x8] sm:$0xff] (!%p189_p2)  ;;  %s772_s24 = sshll.u32 (!%p189_p2), %s767_s19, 4  ;;  %v465_v5 = vld [vmem:[%s1235_s3 + $0x10] sm:$0xff] (!%p189_p2)  ;;  %vm253_vm0 = vcmask (!%p189_p2), 130048  }
   0x6   : > { %192 = sbr.rel (%p189_p2) target bundleno = 482 (0x1e2), region = 40  ;;  %v463_v2 = vld [vmem:[%s1235_s3] sm:$0xff] (!%p189_p2)  ;;  %v1009_v3 = vpack.c.bf16 (!%p189_p2), %v245_v1, %v244_v0  ;;  %p217_p3 = scmp.lt.s32.totalorder (!%p189_p2), %s772_s24, 31  ;;  %v464_v4 = vld [vmem:[%s1235_s3 + $0x8] sm:$0xff] (!%p189_p2)  ;;  %v466_v6 = vld [vmem:[%s1235_s3 + $0x18] sm:$0xff] (!%p189_p2) }
   0x7   : > { %v1013_v7 = vpack.c.bf16 (!%p189_p2), %v464_v4, %v463_v2  ;;  %v1017_v8 = vpack.c.bf16 (!%p189_p2), %v466_v6, %v465_v5  ;;  %v467_v9 = vld [vmem:[%s1235_s3 + $0x20] sm:$0xff] (!%p189_p2)  ;;  %v468_v10 = vld [vmem:[%s1235_s3 + $0x28] sm:$0xff] (!%p189_p2)  ;;  %v469_v16 = vld [vmem:[%s1235_s3 + $0x30] sm:$0xff] (!%p189_p2) }
   0x8   : > { %1010 = vmatprep.subr.bf16.mxu0 (!%p189_p2), %v1009_v3  ;;  %v1021_v14 = vpack.c.bf16 (!%p189_p2), %v468_v10, %v467_v9  ;;  %v470_v17 = vld [vmem:[%s1235_s3 + $0x38] sm:$0xff] (!%p189_p2)  ;;  %v471_v21 = vld [vmem:[%s1235_s3 + $0x40] sm:$0xff] (!%p189_p2)  ;;  %v472_v22 = vld [vmem:[%s1235_s3 + $0x48] sm:$0xff] (!%p189_p2) }
   0x9   : > { %1012 = vmatpush3.bf16.msra.mxu0 (!%p189_p2), %v1009_v3  ;;  %1045 = vmatprep.subr.bf16.mxu1 (!%p189_p2), %v1013_v7  ;;  %v1025_v19 = vpack.c.bf16 (!%p189_p2), %v470_v17, %v469_v16  ;;  %v1029_v24 = vpack.c.bf16 (!%p189_p2), %v472_v22, %v471_v21  ;;  %v473_v26 = vld [vmem:[%s1235_s3 + $0x50] sm:$0xff] (!%p189_p2)  ;;  %v474_v27 = vld [vmem:[%s1235_s3 + $0x58] sm:$0xff] (!%p189_p2)  ;;  %v475_v31 = vld [vmem:[%s1235_s3 + $0x60] sm:$0xff] (!%p189_p2) }
   0xa   : > { %1014 = vmatprep.subr.bf16.mxu0 (!%p189_p2), %v1013_v7  ;;  %1053 = vmatpush3.bf16.msra.mxu1 (!%p189_p2), %v1013_v7  ;;  %v1033_v29 = vpack.c.bf16 (!%p189_p2), %v474_v27, %v473_v26  ;;  %v476_v32 = vld [vmem:[%s1235_s3 + $0x68] sm:$0xff] (!%p189_p2)  ;;  %v477_v40 = vld [vmem:[%s1235_s3 + $0x70] sm:$0xff] (!%p189_p2)  ;;  %v478_v41 = vld [vmem:[%s1235_s3 + $0x78] sm:$0xff] (!%p189_p2) }
   0xb   : > { %1046 = vmatprep.subr.bf16.mxu1 (!%p189_p2), %v1017_v8  ;;  %v1037_v34 = vpack.c.bf16 (!%p189_p2), %v476_v32, %v475_v31  ;;  %v1041_v42 = vpack.c.bf16 (!%p189_p2), %v478_v41, %v477_v40  ;;  %v776_v43 = vld [vmem:[%s1234_s2] ss:$0 sm:$0xff] (!%p189_p2) }
   0xd   : > { %s1239_s24 = smov (!%p217_p3, %s772_s24), 31 }
   0xe   : > { %s773_s8 = sshll.u32 %s1239_s24, 3  ;;  %1054 = vmatpush3.bf16.msra.mxu1 %v1017_v8  ;;  %s775_s17 = sshll.u32 %s1239_s24, 2 }
   0xf   : > { %s1139_s11 = scalar_lea.vmem %s1232_s0, %s773_s8  ;;  %1047 = vmatprep.subr.bf16.mxu1 %v1021_v14  ;;  %s1219_s21 = scalar_lea.vmem %s1237_s5, %s775_s17 }
  0x10   : > { %v228_v11 = vld [vmem:[%s1139_s11] sm:$0xff]  ;;  %v229_v12 = vld [vmem:[%s1139_s11 + $0x8] sm:$0xff]  ;;  %v230_v13 = vld [vmem:[%s1139_s11 + $0x10] sm:$0xff] }
  0x11   : > { %929 = vmatprep.mubr.msk.f32.mxu0 %vm253_vm0, %v228_v11  ;;  %v231_v15 = vld [vmem:[%s1139_s11 + $0x18] sm:$0xff]  ;;  %v232_v18 = vld [vmem:[%s1139_s11 + $0x20] sm:$0xff]  ;;  %v233_v20 = vld [vmem:[%s1139_s11 + $0x28] sm:$0xff] }
  0x12   : > { %930 = vmatmul.mubr.msk.f32.vlgmr.msra.gmra.mrb[0].mxu0 %vm253_vm0, %v229_v12  ;;  %1055 = vmatpush3.bf16.msra.mxu1 %v1021_v14  ;;  %v234_v23 = vld [vmem:[%s1139_s11 + $0x30] sm:$0xff]  ;;  %v235_v25 = vld [vmem:[%s1139_s11 + $0x38] sm:$0xff]  ;;  %v236_v28 = vld [vmem:[%s1139_s11 + $0x40] sm:$0xff] }
  0x13   : > { %932 = vmatprep.mubr.msk.f32.mxu0 %vm253_vm0, %v230_v13  ;;  %1016 = vmatpush3.bf16.msra.mxu0 %v1013_v7  ;;  %v237_v30 = vld [vmem:[%s1139_s11 + $0x48] sm:$0xff]  ;;  %v238_v33 = vld [vmem:[%s1139_s11 + $0x50] sm:$0xff]  ;;  %v239_v35 = vld [vmem:[%s1139_s11 + $0x58] sm:$0xff] }
  0x14   : > { %1018 = vmatprep.subr.bf16.mxu0 %v1017_v8  ;;  %1048 = vmatprep.subr.bf16.mxu1 %v1025_v19  ;;  %v240_v36 = vld [vmem:[%s1139_s11 + $0x60] sm:$0xff]  ;;  %v241_v37 = vld [vmem:[%s1139_s11 + $0x68] sm:$0xff]  ;;  %v242_v38 = vld [vmem:[%s1139_s11 + $0x70] sm:$0xff] }
  0x15   : > { %v243_v39 = vld [vmem:[%s1139_s11 + $0x78] sm:$0xff] }
  0x16   : > { %933 = vmatmul.mubr.msk.f32.gmra.mrb[2].mxu0 %vm253_vm0, %v231_v15  ;;  %1056 = vmatpush3.bf16.msra.mxu1 %v1025_v19 }
  0x17   : > { %935 = vmatprep.mubr.msk.f32.mxu0 %vm253_vm0, %v232_v18  ;;  %1020 = vmatpush3.bf16.msra.mxu0 %v1017_v8 }
  0x18   : > { %1022 = vmatprep.subr.bf16.mxu0 %v1021_v14  ;;  %1049 = vmatprep.subr.bf16.mxu1 %v1029_v24 }
  0x1a   : > { %936 = vmatmul.mubr.msk.f32.gmra.mrb[4].mxu0 %vm253_vm0, %v233_v20  ;;  %1057 = vmatpush3.bf16.msra.mxu1 %v1029_v24 }
  0x1b   : > { %938 = vmatprep.mubr.msk.f32.mxu0 %vm253_vm0, %v234_v23  ;;  %1024 = vmatpush3.bf16.msra.mxu0 %v1021_v14 }
  0x1c   : > { %1026 = vmatprep.subr.bf16.mxu0 %v1025_v19  ;;  %1050 = vmatprep.subr.bf16.mxu1 %v1033_v29 }
  0x1e   : > { %939 = vmatmul.mubr.msk.f32.gmra.mrb[6].mxu0 %vm253_vm0, %v235_v25  ;;  %1058 = vmatpush3.bf16.msra.mxu1 %v1033_v29 }
  0x1f   : > { %941 = vmatprep.mubr.msk.f32.mxu0 %vm253_vm0, %v236_v28  ;;  %1028 = vmatpush3.bf16.msra.mxu0 %v1025_v19  ;;  %v793_v28 = vld [vmem:[%s1236_s4] ss:$0 sm:$0xff] }
  0x20   : > { %1030 = vmatprep.subr.bf16.mxu0 %v1029_v24  ;;  %1051 = vmatprep.subr.bf16.mxu1 %v1037_v34 }
  0x22   : > { %942 = vmatmul.mubr.msk.f32.gmra.mrb[8].mxu0 %vm253_vm0, %v237_v30  ;;  %1059 = vmatpush3.bf16.msra.mxu1 %v1037_v34 }
  0x23   : > { %944 = vmatprep.mubr.msk.f32.mxu0 %vm253_vm0, %v238_v33  ;;  %1032 = vmatpush3.bf16.msra.mxu0 %v1029_v24 }
  0x24   : > { %1034 = vmatprep.subr.bf16.mxu0 %v1033_v29  ;;  %1052 = vmatprep.subr.bf16.mxu1 %v1041_v42 }
  0x26   : > { %945 = vmatmul.mubr.msk.f32.gmra.mrb[10].mxu0 %vm253_vm0, %v239_v35  ;;  %1060 = vmatpush3.bf16.msra.mxu1 %v1041_v42 }
  0x27   : > { %947 = vmatprep.mubr.msk.f32.mxu0 %vm253_vm0, %v240_v36  ;;  %1036 = vmatpush3.bf16.msra.mxu0 %v1033_v29 }
  0x28   : > { %1038 = vmatprep.subr.bf16.mxu0 %v1037_v34 }
  0x2a   : > { %948 = vmatmul.mubr.msk.f32.gmra.mrb[12].mxu0 %vm253_vm0, %v241_v37 }
  0x2b   : > { %950 = vmatprep.mubr.msk.f32.mxu0 %vm253_vm0, %v242_v38  ;;  %1040 = vmatpush3.bf16.msra.mxu0 %v1037_v34 }
  0x2c   : > { %1042 = vmatprep.subr.bf16.mxu0 %v1041_v42 }
  0x2e   : > { %951 = vmatmul.mubr.msk.f32.gmra.mrb[14].mxu0 %vm253_vm0, %v243_v39 }
  0x2f   : > { %1044 = vmatpush3.bf16.msra.mxu0 %v1041_v42 }
  0xe5   : > { %v931_v44 = vpop.f32.mrb[0].mxu0 }
  0xe6   : > { %v374_v45 = vadd.f32 %v931_v44, %v776_v43  ;;  %v368_v46 = vpop.f32.mrb[1].mxu0 }
  0xe7   : > { %v369_v47 = vadd.f32 %v776_v43, %v368_v46 }
  0xe8   : > { %v448_v50 = vmax.f32 %v374_v45, 0.0 }
  0xe9   : > { %v447_v48 = vmax.f32 %v369_v47, 0.0  ;;  %v934_v49 = vpop.f32.mrb[2].mxu0 }
  0xea   : > { %v384_v51 = vadd.f32 %v934_v49, %v776_v43  ;;  %v378_v52 = vpop.f32.mrb[3].mxu0 }
  0xeb   : > { %v379_v53 = vadd.f32 %v776_v43, %v378_v52  ;;  %985 = vmatprep.mubr.f32.mxu0 %v447_v48 }
  0xec   : > { %986 = vmatmul.mubr.f32.vlgmr.msra.gmra.mrb[16].mxu0 %v448_v50  ;;  %v450_v56 = vmax.f32 %v384_v51, 0.0 }
  0xed   : > { %v449_v54 = vmax.f32 %v379_v53, 0.0  ;;  %v937_v55 = vpop.f32.mrb[4].mxu0 }
  0xee   : > { %v394_v57 = vadd.f32 %v937_v55, %v776_v43  ;;  %v388_v58 = vpop.f32.mrb[5].mxu0 }
  0xef   : > { %v389_v59 = vadd.f32 %v776_v43, %v388_v58  ;;  %988 = vmatprep.mubr.f32.mxu0 %v449_v54 }
  0xf0   : > { %989 = vmatmul.mubr.f32.gmra.mrb[18].mxu0 %v450_v56  ;;  %v452_v62 = vmax.f32 %v394_v57, 0.0 }
  0xf1   : > { %v451_v60 = vmax.f32 %v389_v59, 0.0  ;;  %v940_v61 = vpop.f32.mrb[6].mxu0 }
  0xf2   : > { %v404_v63 = vadd.f32 %v940_v61, %v776_v43  ;;  %v398_v0 = vpop.f32.mrb[7].mxu0 }
  0xf3   : > { %991 = vmatprep.mubr.f32.mxu0 %v451_v60  ;;  %v399_v1 = vadd.f32 %v776_v43, %v398_v0 }
  0xf4   : > { %992 = vmatmul.mubr.f32.gmra.mrb[20].mxu0 %v452_v62  ;;  %v454_v4 = vmax.f32 %v404_v63, 0.0 }
  0xf5   : > { %v943_v2 = vpop.f32.mrb[8].mxu0  ;;  %v453_v3 = vmax.f32 %v399_v1, 0.0 }
  0xf6   : > { %v414_v5 = vadd.f32 %v943_v2, %v776_v43  ;;  %v408_v6 = vpop.f32.mrb[9].mxu0 }
  0xf7   : > { %v409_v7 = vadd.f32 %v776_v43, %v408_v6  ;;  %994 = vmatprep.mubr.f32.mxu1 %v453_v3 }
  0xf8   : > { %995 = vmatmul.mubr.f32.vlgmr.msra.gmra.mrb[0].mxu1 %v454_v4  ;;  %v456_v10 = vmax.f32 %v414_v5, 0.0 }
  0xf9   : > { %v455_v8 = vmax.f32 %v409_v7, 0.0  ;;  %v946_v9 = vpop.f32.mrb[10].mxu0 }
  0xfa   : > { %v424_v11 = vadd.f32 %v946_v9, %v776_v43  ;;  %v418_v12 = vpop.f32.mrb[11].mxu0 }
  0xfb   : > { %v419_v13 = vadd.f32 %v776_v43, %v418_v12  ;;  %997 = vmatprep.mubr.f32.mxu1 %v455_v8 }
  0xfc   : > { %998 = vmatmul.mubr.f32.gmra.mrb[2].mxu1 %v456_v10  ;;  %v458_v16 = vmax.f32 %v424_v11, 0.0 }
  0xfd   : > { %v457_v14 = vmax.f32 %v419_v13, 0.0  ;;  %v949_v15 = vpop.f32.mrb[12].mxu0 }
  0xfe   : > { %v434_v17 = vadd.f32 %v949_v15, %v776_v43  ;;  %v428_v18 = vpop.f32.mrb[13].mxu0 }
  0xff   : > { %v429_v19 = vadd.f32 %v776_v43, %v428_v18  ;;  %1000 = vmatprep.mubr.f32.mxu1 %v457_v14 }
 0x100   : > { %1001 = vmatmul.mubr.f32.gmra.mrb[4].mxu1 %v458_v16  ;;  %v460_v22 = vmax.f32 %v434_v17, 0.0 }
 0x101   : > { %v459_v20 = vmax.f32 %v429_v19, 0.0  ;;  %v952_v21 = vpop.f32.mrb[14].mxu0 }
 0x102   : > { %v444_v23 = vadd.f32 %v952_v21, %v776_v43  ;;  %v438_v24 = vpop.f32.mrb[15].mxu0 }
 0x103   : > { %v439_v25 = vadd.f32 %v776_v43, %v438_v24  ;;  %1003 = vmatprep.mubr.f32.mxu1 %v459_v20 }
 0x104   : > { %1004 = vmatmul.mubr.f32.gmra.mrb[6].mxu1 %v460_v22  ;;  %v462_v27 = vmax.f32 %v444_v23, 0.0 }
 0x105   : > { %v461_v26 = vmax.f32 %v439_v25, 0.0 }
 0x107   : > { %1006 = vmatprep.mubr.f32.mxu1 %v461_v26 }
 0x108   : > { %1007 = vmatmul.mubr.f32.gmra.mrb[8].mxu1 %v462_v27 }
 0x1bf   : > { %v987_v29 = vpop.f32.mrb[16].mxu0 }
 0x1c0   : > { %v558_v30 = vadd.f32 %v987_v29, %v793_v28  ;;  %v552_v31 = vpop.f32.mrb[17].mxu0 }
 0x1c1   : > { %v553_v32 = vadd.f32 %v793_v28, %v552_v31 }
 0x1c3   : > { %v831_v33 = vpack.c.bf16 %v558_v30, %v553_v32  ;;  %v990_v34 = vpop.f32.mrb[18].mxu0 }
 0x1c4   : > { %v568_v35 = vadd.f32 %v990_v34, %v793_v28  ;;  %v562_v36 = vpop.f32.mrb[19].mxu0 }
 0x1c5   : > { %832 = vst [vmem:[%s1219_s21] sm:$0xff] %v831_v33   ;;  %v563_v37 = vadd.f32 %v793_v28, %v562_v36 }
 0x1c7   : > { %v836_v38 = vpack.c.bf16 %v568_v35, %v563_v37  ;;  %v993_v39 = vpop.f32.mrb[20].mxu0 }
 0x1c8   : > { %v578_v40 = vadd.f32 %v993_v39, %v793_v28  ;;  %v572_v41 = vpop.f32.mrb[21].mxu0 }
 0x1c9   : > { %868 = vst [vmem:[%s1219_s21 + $0x8] sm:$0xff] %v836_v38   ;;  %v573_v42 = vadd.f32 %v793_v28, %v572_v41 }
 0x1cb   : > { %v841_v43 = vpack.c.bf16 %v578_v40, %v573_v42  ;;  %v996_v44 = vpop.f32.mrb[0].mxu1 }
 0x1cc   : > { %v588_v45 = vadd.f32 %v996_v44, %v793_v28  ;;  %v582_v46 = vpop.f32.mrb[1].mxu1 }
 0x1cd   : > { %869 = vst [vmem:[%s1219_s21 + $0x10] sm:$0xff] %v841_v43   ;;  %v583_v47 = vadd.f32 %v793_v28, %v582_v46 }
 0x1cf   : > { %v846_v48 = vpack.c.bf16 %v588_v45, %v583_v47  ;;  %v999_v49 = vpop.f32.mrb[2].mxu1 }
 0x1d0   : > { %v598_v50 = vadd.f32 %v999_v49, %v793_v28  ;;  %v592_v51 = vpop.f32.mrb[3].mxu1 }
 0x1d1   : > { %870 = vst [vmem:[%s1219_s21 + $0x18] sm:$0xff] %v846_v48   ;;  %v593_v52 = vadd.f32 %v793_v28, %v592_v51 }
 0x1d3   : > { %v851_v53 = vpack.c.bf16 %v598_v50, %v593_v52  ;;  %v1002_v54 = vpop.f32.mrb[4].mxu1 }
 0x1d4   : > { %v608_v55 = vadd.f32 %v1002_v54, %v793_v28  ;;  %v602_v56 = vpop.f32.mrb[5].mxu1 }
 0x1d5   : > { %871 = vst [vmem:[%s1219_s21 + $0x20] sm:$0xff] %v851_v53   ;;  %v603_v57 = vadd.f32 %v793_v28, %v602_v56 }
 0x1d7   : > { %v856_v58 = vpack.c.bf16 %v608_v55, %v603_v57  ;;  %v1005_v59 = vpop.f32.mrb[6].mxu1 }
 0x1d8   : > { %v618_v60 = vadd.f32 %v1005_v59, %v793_v28  ;;  %v612_v61 = vpop.f32.mrb[7].mxu1 }
 0x1d9   : > { %872 = vst [vmem:[%s1219_s21 + $0x28] sm:$0xff] %v856_v58   ;;  %v613_v62 = vadd.f32 %v793_v28, %v612_v61 }
 0x1db   : > { %v861_v63 = vpack.c.bf16 %v618_v60, %v613_v62  ;;  %v1008_v0 = vpop.f32.mrb[8].mxu1 }
 0x1dc   : > { %v628_v1 = vadd.f32 %v1008_v0, %v793_v28  ;;  %v622_v2 = vpop.f32.mrb[9].mxu1 }
 0x1dd   : > { %873 = vst [vmem:[%s1219_s21 + $0x30] sm:$0xff] %v861_v63   ;;  %v623_v3 = vadd.f32 %v793_v28, %v622_v2 }
 0x1df   : > { %v866_v4 = vpack.c.bf16 %v628_v1, %v623_v3 }
 0x1e1   : > { %874 = vst [vmem:[%s1219_s21 + $0x38] sm:$0xff] %v866_v4  }
 0x1e2 PF: > { %s15_s18 = sadd.s32 1, %s1075_s18  }
 0x1e3   : > { %p12_p4 = scmp.ge.s32.totalorder %s15_s18, 4  }
 0x1e5   :  { %14 = sbr.rel (!%p12_p4) target bundleno = 1 (0x1), region = 70 }

// kernel: appnp2net_forward.4
= control target key start
LH: loop header
LB: loop body
LE: loop exit
PB: predicated region body
PF: predicated region fallthrough
CT: control target
= control target key end

     0   :  { %s1317_s0 = inlined_call_operand.vmem [shape: s8[256,256], index: 0, kind: input, shape index: {}]   ;;  %s1318_s1 = inlined_call_operand.vmem [shape: bf16[256,128], index: 1, kind: input, shape index: {}, may-alias: {1,2}]   ;;  %s1319_s2 = inlined_call_operand.vmem [shape: bf16[256,128], index: 2, kind: input, shape index: {}, may-alias: {1,2}]   ;;  %s1320_s3 = inlined_call_operand.<no memory space> [shape: f32[1], index: 3, kind: input, shape index: {}]   ;;  %s1321_s4 = inlined_call_operand.vmem [shape: bf16[256,128], index: 4, kind: output, shape index: {}]  }
   0x1   :  { %9 = sst [smem:[#allocation3]] %s1320_s3 }
   0x2   :  { %s1166_s17 = smov 0   ;;  %s1168_s18 = smov 0  }
   0x3   :  { %s1170_s19 = smov 0   ;;  %s1172_s20 = smov 0  }
   0x4   :  { %s1174_s21 = smov 0   ;;  %s1176_s22 = smov 0  }
   0x5   :  { %s1178_s23 = smov 0  }
   0x6 LB: > { %s24_s3 = sadd.s32 1, %s1127_s21  ;;  %s27_s24 = sadd.s32 1, %s1131_s22  ;;  %s1135_s23 = sphi %s1178_s23, %s15_s23   ;;  %s1131_s22 = sphi %s1176_s22, %s1327_s22   ;;  %s1127_s21 = sphi %s1174_s21, %s1326_s21   ;;  %s1123_s20 = sphi %s1172_s20, %s1325_s20   ;;  %s1119_s19 = sphi %s1170_s19, %s1324_s19   ;;  %s1115_s18 = sphi %s1168_s18, %s1323_s18   ;;  %s1111_s17 = sphi %s1166_s17, %s1322_s17  }
   0x7   : > { %p25_p0 = scmp.ge.s32.totalorder %s24_s3, 2  ;;  %p43_p1 = scmp.ne.s32.totalorder %s1115_s18, %s1111_s17 }
   0x8   : > { %p44_p2 = scmp.eq.s32.totalorder %s1135_s23, 0  ;;  %s36_s28 = sadd.s32 1, %s1115_s18 }
   0x9   : > { %s1329_s3 = smov (%p25_p0, %s24_s3), 0  ;;  %s1331_s24 = smov (!%p25_p0, %s27_s24), %s1131_s22 }
   0xa   : > { %p45_p3 = por %p44_p2, %p43_p1  ;;  %p29_p4 = scmp.ge.s32.totalorder %s1331_s24, 2 }
   0xb   : > { %s32_s25 = ssub.s32 %s1127_s21, %s1329_s3  ;;  %p808_p6 = scmp.ge.s32.totalorder %s1135_s23, 4 }
   0xc   : > { %s1333_s24 = smov (%p29_p4, %s1331_s24), 0 }
   0xd   : > { %s31_s26 = ssub.s32 %s1131_s22, %s1333_s24  ;;  %169 = sbr.rel (%p808_p6) target bundleno = 28 (0x1c), region = 24 }
   0xe   : > { %s33_s27 = sor.u32 %s32_s25, %s31_s26 }
   0xf   : > { %p34_p5 = scmp.eq.s32.totalorder %s33_s27, 0 }
  0x11   : > { %s1217_s29 = scalar_select %p34_p5, %s1115_s18, %s36_s28  }
  0x14   : > { %172 = sbr.rel (!%p45_p3) target bundleno = 28 (0x1c), region = 28  ;;  %s174_s30 = sand.u32 (%p45_p3), 1, %s1115_s18  }
  0x15   : > { %s849_s5 = sshll.u32 (%p45_p3), %s1131_s22, 3  ;;  %s809_s6 = sshll.u32 (%p45_p3), %s174_s30, 5 }
  0x16   : > { %s179_s7 = sadd.s32 (%p45_p3), %s1127_s21, %s849_s5  ;;  %s176_s12 = scalar_lea.vmem (%p45_p3), [#allocation4], %s809_s6 }
  0x17   : > { %s812_s8 = sshll.u32 (%p45_p3), %s179_s7, 3 }
  0x18   : > { %s181_s11 = scalar_lea.vmem (%p45_p3), %s1317_s0, %s812_s8 }
  0x19   : > { %v215_v0 = vld [vmem:[%s181_s11] sm:$0xff] (%p45_p3)  ;;  %v217_v1 = vld [vmem:[%s181_s11 + $0x10] sm:$0xff] (%p45_p3) }
  0x1a   : > { %v219_v2 = vld [vmem:[%s181_s11 + $0x20] sm:$0xff] (%p45_p3)  ;;  %216 = vst [vmem:[%s176_s12] sm:$0xff] (%p45_p3), %v215_v0  ;;  %218 = vst [vmem:[%s176_s12 + $0x8] sm:$0xff] (%p45_p3), %v217_v1  ;;  %v221_v3 = vld [vmem:[%s181_s11 + $0x30] sm:$0xff] (%p45_p3) }
  0x1b   : > { %220 = vst [vmem:[%s176_s12 + $0x10] sm:$0xff] %v219_v2  ;;  %222 = vst [vmem:[%s176_s12 + $0x18] sm:$0xff] %v221_v3 }
  0x1c PF: > { %p813_p7 = scmp.ge.s32.totalorder %s1135_s23, 1  ;;  %p236_p8 = scmp.lt.s32.totalorder %s1135_s23, 5 }
  0x1e   : > { %p237_p9 = pnand %p813_p7, %p236_p8 }
  0x1f   : > { %s243_s13 = sand.u32 (!%p237_p9), 1, %s1111_s17   ;;  %s815_s14 = sshll.u32 (!%p237_p9), %s1123_s20, 4 }
  0x20   : > { %240 = sbr.rel (%p237_p9) target bundleno = 328 (0x148), region = 70  ;;  %s814_s15 = sshll.u32 (!%p237_p9), %s243_s13, 5 }
  0x21   : > { %p275_p10 = scmp.lt.s32.totalorder (!%p237_p9), %s815_s14, 31  ;;  %s1240_s6 = scalar_lea.vmem (!%p237_p9), [#allocation4], %s814_s15 }
  0x22   : > { %p819_p11 = scmp.ne.s32.totalorder (!%p237_p9), %s1119_s19, 0 }
  0x27   : > { %s1335_s14 = smov (!%p275_p10, %s815_s14), 31  ;;  %290 = sbr.rel (%p819_p11) target bundleno = 49 (0x31), region = 78 }
  0x28   : > { %s816_s16 = sshll.u32 %s1335_s14, 2  ;;  %v1137_v4 = vmov (!%p819_p11), 0.0  }
  0x29   : > { %s1233_s27 = scalar_lea.vmem %s1319_s2, %s816_s16  ;;  %s1238_s5 = scalar_lea.vmem %s1321_s4, %s816_s16  ;;  %291 = vst [vmem:[#allocation2] sm:$0xff] (!%p819_p11), %v1137_v4  ;;  %292 = vst [vmem:[#allocation2 + $0x8] sm:$0xff] (!%p819_p11), %v1137_v4 }
  0x2a   : > { %293 = vst [vmem:[#allocation2 + $0x10] sm:$0xff] (!%p819_p11), %v1137_v4  ;;  %294 = vst [vmem:[#allocation2 + $0x18] sm:$0xff] (!%p819_p11), %v1137_v4 }
  0x2b   : > { %295 = vst [vmem:[#allocation2 + $0x20] sm:$0xff] (!%p819_p11), %v1137_v4  ;;  %296 = vst [vmem:[#allocation2 + $0x28] sm:$0xff] (!%p819_p11), %v1137_v4 }
  0x2c   : > { %297 = vst [vmem:[#allocation2 + $0x30] sm:$0xff] (!%p819_p11), %v1137_v4  ;;  %298 = vst [vmem:[#allocation2 + $0x38] sm:$0xff] (!%p819_p11), %v1137_v4 }
  0x2d   : > { %299 = vst [vmem:[#allocation2 + $0x40] sm:$0xff] (!%p819_p11), %v1137_v4  ;;  %300 = vst [vmem:[#allocation2 + $0x48] sm:$0xff] (!%p819_p11), %v1137_v4 }
  0x2e   : > { %301 = vst [vmem:[#allocation2 + $0x50] sm:$0xff] %v1137_v4  ;;  %302 = vst [vmem:[#allocation2 + $0x58] sm:$0xff] %v1137_v4 }
  0x2f   : > { %303 = vst [vmem:[#allocation2 + $0x60] sm:$0xff] %v1137_v4  ;;  %304 = vst [vmem:[#allocation2 + $0x68] sm:$0xff] %v1137_v4 }
  0x30   : > { %305 = vst [vmem:[#allocation2 + $0x70] sm:$0xff] %v1137_v4  ;;  %306 = vst [vmem:[#allocation2 + $0x78] sm:$0xff] %v1137_v4 }
  0x31 PF: > { %s820_s17 = sshll.u32 %s1119_s19, 7  ;;  %v307_v5 = vld [vmem:[%s1240_s6] sm:$0xff]  ;;  %v309_v6 = vld [vmem:[%s1240_s6 + $0x10] sm:$0xff]  ;;  %v308_v17 = vld [vmem:[%s1240_s6 + $0x8] sm:$0xff]  ;;  %p830_p12 = scmp.ne.s32.totalorder %s1119_s19, 1 }
  0x32   : > { %s336_s20 = sshra.s32 %s820_s17, 3  ;;  %v311_v7 = vunpack.c.l.s8.bf16 %v307_v5  ;;  %v315_v8 = vunpack.c.l.s8.bf16 %v309_v6  ;;  %v310_v18 = vld [vmem:[%s1240_s6 + $0x18] sm:$0xff]  ;;  %v312_v19 = vunpack.c.h.s8.bf16 %v307_v5  ;;  %v316_v20 = vunpack.c.h.s8.bf16 %v309_v6  ;;  %s553_s11 = sld [smem:[#allocation3]] (!%p830_p12) }
  0x33   : > { %s821_s7 = sshll.u32 %s336_s20, 2  ;;  %v313_v21 = vunpack.c.l.s8.bf16 %v308_v17  ;;  %v317_v22 = vunpack.c.l.s8.bf16 %v310_v18  ;;  %v314_v23 = vunpack.c.h.s8.bf16 %v308_v17  ;;  %v318_v24 = vunpack.c.h.s8.bf16 %v310_v18  ;;  %v319_v27 = vld [vmem:[#allocation2] sm:$0xff]  ;;  %v320_v37 = vld [vmem:[#allocation2 + $0x8] sm:$0xff] }
  0x34   : > { %s1249_s10 = scalar_lea.vmem %s1318_s1, %s821_s7  ;;  %984 = vmatprep.mubr.bf16.mxu0 %v311_v7  ;;  %992 = vmatprep.mubr.bf16.mxu1 %v315_v8  ;;  %v321_v25 = vld [vmem:[#allocation2 + $0x10] sm:$0xff]  ;;  %v322_v31 = vld [vmem:[#allocation2 + $0x18] sm:$0xff] }
  0x35   : > { %v1073_v9 = vld [vmem:[%s1249_s10] sm:$0xff]   ;;  %v1074_v10 = vld [vmem:[%s1249_s10 + $0x8] sm:$0xff]   ;;  %v1075_v11 = vld [vmem:[%s1249_s10 + $0x10] sm:$0xff]  }
  0x36   : > { %968 = vmatprep.subr.bf16.mxu0 %v1073_v9  ;;  %1000 = vmatprep.subr.bf16.mxu1 %v1073_v9  ;;  %v1076_v12 = vld [vmem:[%s1249_s10 + $0x18] sm:$0xff]   ;;  %v1077_v13 = vld [vmem:[%s1249_s10 + $0x20] sm:$0xff]   ;;  %v1078_v14 = vld [vmem:[%s1249_s10 + $0x28] sm:$0xff]  }
  0x37   : > { %969 = vmatpush3.bf16.msra.mxu0 %v1073_v9  ;;  %1008 = vmatpush3.bf16.msra.mxu1 %v1073_v9  ;;  %v1079_v15 = vld [vmem:[%s1249_s10 + $0x30] sm:$0xff]   ;;  %v1080_v16 = vld [vmem:[%s1249_s10 + $0x38] sm:$0xff]   ;;  %v327_v28 = vld [vmem:[#allocation2 + $0x40] sm:$0xff] }
  0x38   : > { %970 = vmatprep.subr.bf16.mxu0 %v1074_v10  ;;  %1001 = vmatprep.subr.bf16.mxu1 %v1074_v10  ;;  %v329_v26 = vld [vmem:[#allocation2 + $0x50] sm:$0xff]  ;;  %v330_v32 = vld [vmem:[#allocation2 + $0x58] sm:$0xff]  ;;  %v328_v38 = vld [vmem:[#allocation2 + $0x48] sm:$0xff] }
  0x39   : > { %v325_v49 = vld [vmem:[#allocation2 + $0x30] sm:$0xff]  ;;  %v323_v51 = vld [vmem:[#allocation2 + $0x20] sm:$0xff]  ;;  %v326_v55 = vld [vmem:[#allocation2 + $0x38] sm:$0xff] }
  0x3a   : > { %v333_v50 = vld [vmem:[#allocation2 + $0x70] sm:$0xff]  ;;  %v331_v52 = vld [vmem:[#allocation2 + $0x60] sm:$0xff]  ;;  %v334_v56 = vld [vmem:[#allocation2 + $0x78] sm:$0xff] }
  0x3b   : > { %971 = vmatpush3.bf16.msra.mxu0 %v1074_v10  ;;  %1009 = vmatpush3.bf16.msra.mxu1 %v1074_v10  ;;  %v324_v61 = vld [vmem:[#allocation2 + $0x28] sm:$0xff]  ;;  %v867_v9 = vld [vmem:[%s1233_s27] sm:$0xff] (!%p830_p12)  }
  0x3c   : > { %972 = vmatprep.subr.bf16.mxu0 %v1075_v11  ;;  %1002 = vmatprep.subr.bf16.mxu1 %v1075_v11  ;;  %v332_v62 = vld [vmem:[#allocation2 + $0x68] sm:$0xff]  ;;  %v868_v10 = vunpack.c.l.bf16 (!%p830_p12), %v867_v9 }
  0x3f   : > { %973 = vmatpush3.bf16.msra.mxu0 %v1075_v11  ;;  %1010 = vmatpush3.bf16.msra.mxu1 %v1075_v11  ;;  %v869_v11 = vunpack.c.h.bf16 (!%p830_p12), %v867_v9 }
  0x40   : > { %974 = vmatprep.subr.bf16.mxu0 %v1076_v12  ;;  %1003 = vmatprep.subr.bf16.mxu1 %v1076_v12 }
  0x43   : > { %975 = vmatpush3.bf16.msra.mxu0 %v1076_v12  ;;  %1011 = vmatpush3.bf16.msra.mxu1 %v1076_v12  ;;  %v938_v12 = vld [vmem:[%s1233_s27 + $0x8] sm:$0xff] (!%p830_p12)  }
  0x44   : > { %976 = vmatprep.subr.bf16.mxu0 %v1077_v13  ;;  %1004 = vmatprep.subr.bf16.mxu1 %v1077_v13  ;;  %v872_v17 = vunpack.c.l.bf16 (!%p830_p12), %v938_v12  ;;  %v873_v18 = vunpack.c.h.bf16 (!%p830_p12), %v938_v12 }
  0x47   : > { %977 = vmatpush3.bf16.msra.mxu0 %v1077_v13  ;;  %1012 = vmatpush3.bf16.msra.mxu1 %v1077_v13 }
  0x48   : > { %978 = vmatprep.subr.bf16.mxu0 %v1078_v14  ;;  %1005 = vmatprep.subr.bf16.mxu1 %v1078_v14 }
  0x4b   : > { %979 = vmatpush3.bf16.msra.mxu0 %v1078_v14  ;;  %1013 = vmatpush3.bf16.msra.mxu1 %v1078_v14 }
  0x4c   : > { %980 = vmatprep.subr.bf16.mxu0 %v1079_v15  ;;  %1006 = vmatprep.subr.bf16.mxu1 %v1079_v15 }
  0x4f   : > { %981 = vmatpush3.bf16.msra.mxu0 %v1079_v15  ;;  %1014 = vmatpush3.bf16.msra.mxu1 %v1079_v15 }
  0x50   : > { %982 = vmatprep.subr.bf16.mxu0 %v1080_v16  ;;  %1007 = vmatprep.subr.bf16.mxu1 %v1080_v16 }
  0x53   : > { %983 = vmatpush3.bf16.msra.mxu0 %v1080_v16  ;;  %1015 = vmatpush3.bf16.msra.mxu1 %v1080_v16 }
  0x56   : > { %985 = vmatmul.mubr.bf16.vlgmr.msra.gmra.mrb[0].mxu0 %v312_v19  ;;  %993 = vmatmul.mubr.bf16.vlgmr.msra.gmra.mrb[0].mxu1 %v316_v20  ;;  %v939_v19 = vld [vmem:[%s1233_s27 + $0x10] sm:$0xff] (!%p830_p12)   ;;  %v603_v20 = vmul.f32 (!%p830_p12), 0.1, %v868_v10 }
  0x57   : > { %988 = vmatprep.mubr.bf16.mxu0 %v313_v21  ;;  %996 = vmatprep.mubr.bf16.mxu1 %v317_v22  ;;  %v604_v21 = vmul.f32 (!%p830_p12), 0.1, %v869_v11 }
  0x5e   : > { %989 = vmatmul.mubr.bf16.gmra.mrb[4].mxu0 %v314_v23  ;;  %997 = vmatmul.mubr.bf16.gmra.mrb[4].mxu1 %v318_v24  ;;  %v876_v24 = vunpack.c.l.bf16 (!%p830_p12), %v939_v19 }
 0x129   : > { %v986_v29 = vpop.f32.mrb[0].mxu0  ;;  %v994_v30 = vpop.f32.mrb[0].mxu1 }
 0x12a   : > { %v503_v33 = vadd.f32 %v986_v29, %v321_v25  ;;  %v511_v34 = vadd.f32 %v994_v30, %v329_v26  ;;  %v438_v35 = vpop.f32.mrb[1].mxu0  ;;  %v470_v36 = vpop.f32.mrb[1].mxu1  ;;  %v877_v25 = vunpack.c.h.bf16 (!%p830_p12), %v939_v19  ;;  %v605_v26 = vmul.f32 (!%p830_p12), 0.1, %v872_v17  ;;  %v940_v29 = vld [vmem:[%s1233_s27 + $0x18] sm:$0xff] (!%p830_p12)  }
 0x12b   : > { %v501_v39 = vadd.f32 %v438_v35, %v319_v27  ;;  %v509_v40 = vadd.f32 %v470_v36, %v327_v28  ;;  %v987_v41 = vpop.f32.mrb[2].mxu0  ;;  %v995_v42 = vpop.f32.mrb[2].mxu1  ;;  %v606_v27 = vmul.f32 (!%p830_p12), 0.1, %v873_v18  ;;  %v607_v30 = vmul.f32 (!%p830_p12), 0.1, %v876_v24 }
 0x12c   : > { %519 = vst [vmem:[#allocation2 + $0x10] sm:$0xff] %v503_v33  ;;  %527 = vst [vmem:[#allocation2 + $0x50] sm:$0xff] %v511_v34  ;;  %v504_v43 = vadd.f32 %v987_v41, %v322_v31  ;;  %v512_v44 = vadd.f32 %v995_v42, %v330_v32  ;;  %v441_v45 = vpop.f32.mrb[3].mxu0  ;;  %v473_v46 = vpop.f32.mrb[3].mxu1  ;;  %v608_v31 = vmul.f32 (!%p830_p12), 0.1, %v877_v25  ;;  %v880_v33 = vunpack.c.l.bf16 (!%p830_p12), %v940_v29 }
 0x12d   : > { %517 = vst [vmem:[#allocation2] sm:$0xff] %v501_v39  ;;  %525 = vst [vmem:[#allocation2 + $0x40] sm:$0xff] %v509_v40  ;;  %v502_v47 = vadd.f32 %v441_v45, %v320_v37  ;;  %v510_v48 = vadd.f32 %v473_v46, %v328_v38  ;;  %v941_v34 = vld [vmem:[%s1233_s27 + $0x20] sm:$0xff] (!%p830_p12)   ;;  %v1267_v35 = vstv (!%p830_p12), %s553_s11  ;;  %v881_v36 = vunpack.c.h.bf16 (!%p830_p12), %v940_v29 }
 0x12e   : > { %520 = vst [vmem:[#allocation2 + $0x18] sm:$0xff] %v504_v43  ;;  %528 = vst [vmem:[#allocation2 + $0x58] sm:$0xff] %v512_v44  ;;  %v884_v37 = vunpack.c.l.bf16 (!%p830_p12), %v941_v34  ;;  %v885_v38 = vunpack.c.h.bf16 (!%p830_p12), %v941_v34 }
 0x12f   : > { %518 = vst [vmem:[#allocation2 + $0x8] sm:$0xff] %v502_v47  ;;  %526 = vst [vmem:[#allocation2 + $0x48] sm:$0xff] %v510_v48 }
 0x131   : > { %v990_v53 = vpop.f32.mrb[4].mxu0  ;;  %v998_v54 = vpop.f32.mrb[4].mxu1  ;;  %536 = sbr.rel (%p830_p12) target bundleno = 328 (0x148), region = 82 }
 0x132   : > { %v507_v57 = vadd.f32 %v990_v53, %v325_v49  ;;  %v515_v58 = vadd.f32 %v998_v54, %v333_v50  ;;  %v454_v59 = vpop.f32.mrb[5].mxu0  ;;  %v486_v60 = vpop.f32.mrb[5].mxu1 }
 0x133   : > { %v505_v63 = vadd.f32 %v454_v59, %v323_v51  ;;  %v513_v0 = vadd.f32 %v486_v60, %v331_v52  ;;  %v991_v1 = vpop.f32.mrb[6].mxu0  ;;  %v999_v2 = vpop.f32.mrb[6].mxu1  ;;  %v539_v15 = vld [vmem:[#allocation2 + $0x10] sm:$0xff] (!%p830_p12) }
 0x134   : > { %523 = vst [vmem:[#allocation2 + $0x30] sm:$0xff] %v507_v57  ;;  %531 = vst [vmem:[#allocation2 + $0x70] sm:$0xff] %v515_v58  ;;  %v508_v3 = vadd.f32 %v991_v1, %v326_v55  ;;  %v516_v4 = vadd.f32 %v999_v2, %v334_v56  ;;  %v457_v5 = vpop.f32.mrb[7].mxu0  ;;  %v489_v6 = vpop.f32.mrb[7].mxu1  ;;  %v537_v13 = vld [vmem:[#allocation2] sm:$0xff] (!%p830_p12)  ;;  %v557_v41 = vmul.f32 (!%p830_p12), %v1267_v35, %v539_v15  ;;  %v547_v57 = vld [vmem:[#allocation2 + $0x50] sm:$0xff] (!%p830_p12) }
 0x135   : > { %521 = vst [vmem:[#allocation2 + $0x20] sm:$0xff] %v505_v63  ;;  %529 = vst [vmem:[#allocation2 + $0x60] sm:$0xff] %v513_v0  ;;  %v506_v7 = vadd.f32 %v457_v5, %v324_v61  ;;  %v514_v8 = vadd.f32 %v489_v6, %v332_v62  ;;  %v540_v16 = vld [vmem:[#allocation2 + $0x18] sm:$0xff] (!%p830_p12)  ;;  %v555_v39 = vmul.f32 (!%p830_p12), %v1267_v35, %v537_v13  ;;  %v545_v47 = vld [vmem:[#allocation2 + $0x40] sm:$0xff] (!%p830_p12)  ;;  %v609_v55 = vmul.f32 (!%p830_p12), 0.1, %v880_v33 }
 0x136   : > { %524 = vst [vmem:[#allocation2 + $0x38] sm:$0xff] %v508_v3  ;;  %532 = vst [vmem:[#allocation2 + $0x78] sm:$0xff] %v516_v4  ;;  %v538_v14 = vld [vmem:[#allocation2 + $0x8] sm:$0xff] (!%p830_p12)  ;;  %v558_v42 = vmul.f32 (!%p830_p12), %v1267_v35, %v540_v16  ;;  %v621_v51 = vadd.f32 (!%p830_p12), %v605_v26, %v557_v41  ;;  %v610_v56 = vmul.f32 (!%p830_p12), 0.1, %v881_v36  ;;  %v563_v61 = vmul.f32 (!%p830_p12), %v1267_v35, %v545_v47  ;;  %v548_v63 = vld [vmem:[#allocation2 + $0x58] sm:$0xff] (!%p830_p12) }
 0x137   : > { %522 = vst [vmem:[#allocation2 + $0x28] sm:$0xff] %v506_v7  ;;  %530 = vst [vmem:[#allocation2 + $0x68] sm:$0xff] %v514_v8  ;;  %v556_v40 = vmul.f32 (!%p830_p12), %v1267_v35, %v538_v14  ;;  %v546_v48 = vld [vmem:[#allocation2 + $0x48] sm:$0xff] (!%p830_p12)  ;;  %v619_v49 = vadd.f32 (!%p830_p12), %v603_v20, %v555_v39  ;;  %v611_v3 = vmul.f32 (!%p830_p12), 0.1, %v884_v37  ;;  %v943_v5 = vld [vmem:[%s1233_s27 + $0x30] sm:$0xff] (!%p830_p12)   ;;  %v565_v7 = vmul.f32 (!%p830_p12), %v1267_v35, %v547_v57 }
 0x138   : > { %v622_v52 = vadd.f32 %v606_v27, %v558_v42  ;;  %v942_v58 = vld [vmem:[%s1233_s27 + $0x28] sm:$0xff]   ;;  %v564_v62 = vmul.f32 %v1267_v35, %v546_v48  ;;  %v612_v6 = vmul.f32 0.1, %v885_v38  ;;  %v566_v13 = vmul.f32 %v1267_v35, %v548_v63  ;;  %v944_v15 = vld [vmem:[%s1233_s27 + $0x38] sm:$0xff]  }
 0x139   : > { %v620_v50 = vadd.f32 %v604_v21, %v556_v40  ;;  %v888_v8 = vunpack.c.l.bf16 %v942_v58  ;;  %v627_v12 = vadd.f32 %v611_v3, %v563_v61  ;;  %v889_v14 = vunpack.c.h.bf16 %v942_v58 }
 0x13a   : > { %v906_v60 = vpack.c.bf16 %v622_v52, %v621_v51  ;;  %v628_v16 = vadd.f32 %v612_v6, %v564_v62  ;;  %v892_v19 = vunpack.c.l.bf16 %v943_v5 }
 0x13b   : > { %v543_v28 = vld [vmem:[#allocation2 + $0x30] sm:$0xff]  ;;  %v901_v59 = vpack.c.bf16 %v620_v50, %v619_v49  ;;  %v613_v17 = vmul.f32 0.1, %v888_v8  ;;  %v614_v21 = vmul.f32 0.1, %v889_v14 }
 0x13c   : > { %v541_v22 = vld [vmem:[#allocation2 + $0x20] sm:$0xff]  ;;  %v561_v45 = vmul.f32 %v1267_v35, %v543_v28  ;;  %945 = vst [vmem:[%s1238_s5 + $0x8] sm:$0xff] %v906_v60   ;;  %v551_v10 = vld [vmem:[#allocation2 + $0x70] sm:$0xff]  ;;  %v921_v25 = vpack.c.bf16 %v628_v16, %v627_v12  ;;  %v615_v27 = vmul.f32 0.1, %v892_v19  ;;  %v896_v28 = vunpack.c.l.bf16 %v944_v15 }
 0x13d   : > { %v544_v32 = vld [vmem:[#allocation2 + $0x38] sm:$0xff]  ;;  %v559_v43 = vmul.f32 %v1267_v35, %v541_v22  ;;  %v549_v4 = vld [vmem:[#allocation2 + $0x60] sm:$0xff]  ;;  %902 = vst [vmem:[%s1238_s5] sm:$0xff] %v901_v59   ;;  %v569_v24 = vmul.f32 %v1267_v35, %v551_v10  ;;  %v629_v26 = vadd.f32 %v613_v17, %v565_v7  ;;  %v630_v29 = vadd.f32 %v614_v21, %v566_v13 }
 0x13e   : > { %v542_v23 = vld [vmem:[#allocation2 + $0x28] sm:$0xff]  ;;  %v562_v46 = vmul.f32 %v1267_v35, %v544_v32  ;;  %v625_v1 = vadd.f32 %v609_v55, %v561_v45  ;;  %v567_v18 = vmul.f32 %v1267_v35, %v549_v4  ;;  %v552_v20 = vld [vmem:[#allocation2 + $0x78] sm:$0xff]  ;;  %v897_v32 = vunpack.c.h.bf16 %v944_v15  ;;  %948 = vst [vmem:[%s1238_s5 + $0x20] sm:$0xff] %v921_v25  }
 0x13f   : > { %v560_v44 = vmul.f32 %v1267_v35, %v542_v23  ;;  %v623_v53 = vadd.f32 %v607_v30, %v559_v43  ;;  %v550_v9 = vld [vmem:[#allocation2 + $0x68] sm:$0xff]  ;;  %v893_v23 = vunpack.c.h.bf16 %v943_v5  ;;  %v617_v34 = vmul.f32 0.1, %v896_v28 }
 0x140   : > { %v626_v2 = vadd.f32 %v610_v56, %v562_v46  ;;  %v568_v22 = vmul.f32 %v1267_v35, %v550_v9  ;;  %v631_v33 = vadd.f32 %v615_v27, %v567_v18  ;;  %v926_v36 = vpack.c.bf16 %v630_v29, %v629_v26 }
 0x141   : > { %v624_v54 = vadd.f32 %v608_v31, %v560_v44  ;;  %v616_v30 = vmul.f32 0.1, %v893_v23  ;;  %v570_v31 = vmul.f32 %v1267_v35, %v552_v20  ;;  %v618_v38 = vmul.f32 0.1, %v897_v32 }
 0x142   : > { %v916_v11 = vpack.c.bf16 %v626_v2, %v625_v1  ;;  %v633_v39 = vadd.f32 %v617_v34, %v569_v24  ;;  %949 = vst [vmem:[%s1238_s5 + $0x28] sm:$0xff] %v926_v36  }
 0x143   : > { %v911_v0 = vpack.c.bf16 %v624_v54, %v623_v53  ;;  %v632_v37 = vadd.f32 %v616_v30, %v568_v22  ;;  %v634_v41 = vadd.f32 %v618_v38, %v570_v31 }
 0x144   : > { %947 = vst [vmem:[%s1238_s5 + $0x18] sm:$0xff] %v916_v11  }
 0x145   : > { %946 = vst [vmem:[%s1238_s5 + $0x10] sm:$0xff] %v911_v0   ;;  %v931_v40 = vpack.c.bf16 %v632_v37, %v631_v33  ;;  %v936_v42 = vpack.c.bf16 %v634_v41, %v633_v39 }
 0x147   : > { %950 = vst [vmem:[%s1238_s5 + $0x30] sm:$0xff] %v931_v40   ;;  %951 = vst [vmem:[%s1238_s5 + $0x38] sm:$0xff] %v936_v42  }
 0x148 PF: > { %s15_s23 = sadd.s32 1, %s1135_s23   ;;  %s1322_s17 = smov %s1115_s18 }
 0x149   : > { %p12_p13 = scmp.ge.s32.totalorder %s15_s23, 6   ;;  %s1323_s18 = smov %s1217_s29 }
 0x14a   : > { %s1324_s19 = smov %s1127_s21  ;;  %s1325_s20 = smov %s1131_s22 }
 0x14b   : > { %s1326_s21 = smov %s1329_s3  ;;  %s1327_s22 = smov %s1333_s24 }
 0x14c   :  { %14 = sbr.rel (!%p12_p13) target bundleno = 6 (0x6), region = 121 }

</bundles_post_ra>
